<compile_context>
chip_gen: v6e
topology: v6e:2x2x1
jax: 0.10.0
libtpu: 0.0.40
codegen_flags: <defaults>
</compile_context>

<pallas_src>
import jax
import jax.numpy as jnp
from jax import lax
from jax.experimental import pallas as pl
from jax.experimental.pallas import tpu as pltpu


def _round_up(x, m):
    return ((x + m - 1) // m) * m


def _vmem_cap_bytes():
    """Generation-aware VMEM ceiling with a conservative (v7x) fallback."""
    try:
        info = pltpu.get_tpu_info()
        cap = getattr(info, "vmem_capacity_bytes", None)
        if cap:
            return int(cap)
    except Exception:
        pass
    return 64 * 1024 * 1024


def _pointer_kernel(ph_ref, pm_ref, mask_ref, vw_ref, bv_ref, o_ref, acc_ref):
    # ph_ref:  (1, TQ, H)   hs-side projection tile (already includes b_h)
    # pm_ref:  (1, TS, H)   memory-side projection tile (already includes b_m)
    # mask_ref:(1, 1, TS)   1.0 = keep, 0.0 = mask to -1e6
    # vw_ref:  (1, H)       v weight (zero padded on padded hidden slots)
    # bv_ref:  (1,)         v bias (SMEM scalar)
    # o_ref:   (1, TQ, TS)  output tile
    # acc_ref: (TQ_SUB, TS, 128) f32 scratch (deferred v-contraction)
    TQ = o_ref.shape[1]
    TS = o_ref.shape[2]
    H = ph_ref.shape[2]
    HC = 128
    n_hc = H // HC
    TQ_SUB = acc_ref.shape[0]
    n_qs = TQ // TQ_SUB

    mask = mask_ref[0]          # (1, TS)
    bias = bv_ref[0]            # scalar

    def q_body(qs, carry):
        q0 = pl.multiple_of(qs * TQ_SUB, TQ_SUB)
        acc_ref[...] = jnp.zeros_like(acc_ref)

        def h_body(c, inner):
            h0 = pl.multiple_of(c * HC, HC)
            ph_c = ph_ref[0, pl.ds(q0, TQ_SUB), pl.ds(h0, HC)].astype(jnp.float32)  # (TQ_SUB, HC)
            pm_c = pm_ref[0, :, pl.ds(h0, HC)].astype(jnp.float32)                  # (TS, HC)
            vw_c = vw_ref[:, pl.ds(h0, HC)].astype(jnp.float32)                     # (1, HC)
            # Bounded 3-D temp: (TQ_SUB, TS, 128) f32 = 512 KiB.
            t = jnp.tanh(ph_c[:, None, :] + pm_c[None, :, :])
            # Defer the lane reduction: just VPU multiply-accumulate here.
            acc_ref[...] += t * vw_c[None, :, :]
            return inner

        lax.fori_loop(0, n_hc, h_body, 0)

        # Single lane-reduction over hidden (per q sub-tile), then bias + mask.
        sim = jnp.sum(acc_ref[...], axis=-1) + bias                                  # (TQ_SUB, TS)
        sim = jnp.where(mask > 0.0, sim, jnp.float32(-1000000.0))
        o_ref[0, pl.ds(q0, TQ_SUB), :] = sim.astype(o_ref.dtype)
        return carry

    lax.fori_loop(0, n_qs, q_body, 0)


def pointer_forward(hs, memory, ce_mask, wh, bh, wm, bm, vw, vb):
    """JAX/Pallas equivalent of Pointer.forward.

    hs:     (bsz, L, query, hidden)
    memory: (bsz, seq, hidden)
    ce_mask:(bsz, seq) or None
    wh, wm: (hidden, hidden)   torch Linear weights (out, in)
    bh, bm: (hidden,)
    vw:     (1, hidden)        torch Linear(hidden, 1) weight
    vb:     (1,)
    returns (bsz, L, query, seq)
    """
    f32 = jnp.float32
    bsz, seq, hidden = memory.shape
    L, query = hs.shape[1], hs.shape[2]
    Q = L * query
    hs_flat = hs.reshape(bsz, Q, hidden)

    # ---- padded / tiled extents ------------------------------------------
    H_pad = _round_up(hidden, 128)         # lane-aligned hidden chunks
    seq_pad = _round_up(seq, 128)          # lane-dense output columns
    TS = 128                               # keeps the in-kernel temp at 512 KiB
    if Q <= 128:
        Q_pad = _round_up(Q, 16)           # >= bf16 native sublane tile
        TQ = Q_pad
    else:
        Q_pad = _round_up(Q, 128)
        TQ = 128
    TQ_SUB = 8

    # ---- projections as plain XLA matmuls (native dtype, f32 accumulation) -
    ph = jnp.einsum('bqh,oh->bqo', hs_flat, wh,
                    preferred_element_type=f32) + bh.astype(f32)          # (b, Q, H)
    pm = jnp.einsum('bsh,oh->bso', memory, wm,
                    preferred_element_type=f32) + bm.astype(f32)          # (b, S, H)

    # zero-pad: padded hidden slots meet zero-padded v weights -> contribute 0;
    # padded seq columns are masked then sliced; padded Q rows are sliced.
    ph = jnp.pad(ph, ((0, 0), (0, Q_pad - Q), (0, H_pad - hidden)))
    pm = jnp.pad(pm, ((0, 0), (0, seq_pad - seq), (0, H_pad - hidden)))
    vw2 = jnp.pad(vw.reshape(1, hidden).astype(f32), ((0, 0), (0, H_pad - hidden)))
    bv1 = vb.reshape(1).astype(f32)

    if ce_mask is None:
        mask = jnp.ones((bsz, seq), f32)
    else:
        mask = (ce_mask != 0).astype(f32)
    mask = jnp.pad(mask, ((0, 0), (0, seq_pad - seq)))
    mask3 = mask.reshape(bsz, 1, seq_pad)

    # ---- VMEM-budget-aware tile / limit selection --------------------------
    out_itemsize = jnp.dtype(hs.dtype).itemsize
    cap = _vmem_cap_bytes()
    budget = min(int(cap * 0.6), 48 * 1024 * 1024)

    def est_bytes(tq):
        tiles = 2 * 4 * (tq * H_pad + TS * H_pad + TS + H_pad)   # double-buffered f32 inputs
        tiles += 2 * out_itemsize * tq * TS                       # double-buffered output
        scratch = 4 * TQ_SUB * TS * 128                           # acc scratch
        temps = 2 * 4 * TQ_SUB * TS * 128                         # tanh temp headroom
        return tiles + scratch + temps + (4 << 20)                # compiler slack

    while (est_bytes(TQ) > budget and TQ > 2 * TQ_SUB
           and TQ % 2 == 0 and Q_pad % (TQ // 2) == 0):
        TQ //= 2
    vmem_limit = int(min(max(est_bytes(TQ), 24 * 1024 * 1024), budget))

    grid = (bsz, Q_pad // TQ, seq_pad // TS)

    out = pl.pallas_call(
        _pointer_kernel,
        out_shape=jax.ShapeDtypeStruct((bsz, Q_pad, seq_pad), hs.dtype),
        grid_spec=pltpu.PrefetchScalarGridSpec(
            num_scalar_prefetch=0,
            grid=grid,
            in_specs=[
                pl.BlockSpec((1, TQ, H_pad), lambda b, qi, si: (b, qi, 0)),   # ph tile
                pl.BlockSpec((1, TS, H_pad), lambda b, qi, si: (b, si, 0)),   # pm tile
                pl.BlockSpec((1, 1, TS),     lambda b, qi, si: (b, 0, si)),   # mask
                pl.BlockSpec((1, H_pad),     lambda b, qi, si: (0, 0)),       # v weight
                pl.BlockSpec(memory_space=pltpu.MemorySpace.SMEM),            # v bias
            ],
            out_specs=pl.BlockSpec((1, TQ, TS), lambda b, qi, si: (b, qi, si)),
            scratch_shapes=[pltpu.VMEM((TQ_SUB, TS, 128), jnp.float32)],
        ),
        compiler_params=pltpu.CompilerParams(
            dimension_semantics=("parallel", "parallel", "parallel"),
            vmem_limit_bytes=vmem_limit,
        ),
    )(ph, pm, mask3, vw2, bv1)

    return out[:, :Q, :seq].reshape(bsz, L, query, seq)


def pointer_reference(hs, memory, ce_mask, wh, bh, wm, bm, vw, vb):
    """Pure-JAX reference mirroring the PyTorch module exactly."""
    ph = jnp.einsum('blqh,oh->blqo', hs, wh) + bh
    pm = jnp.einsum('bsh,oh->bso', memory, wm) + bm
    t = jnp.tanh(ph[:, :, :, None, :] + pm[:, None, None, :, :])
    sim = jnp.einsum('blqsh,h->blqs', t, vw[0]) + vb[0]
    if ce_mask is not None:
        sim = jnp.where(ce_mask[:, None, None, :] > 0, sim, -1000000.0)
    return sim


if __name__ == "__main__":
    key = jax.random.PRNGKey(0)
    k_hs, k_mem, k_wh, k_bh, k_wm, k_bm, k_vw, k_vb = jax.random.split(key, 8)

    bsz, L, query, seq, hidden = 2, 1, 8, 8, 32

    hs = jax.random.normal(k_hs, (bsz, L, query, hidden), dtype=jnp.float32)
    memory = jax.random.normal(k_mem, (bsz, seq, hidden), dtype=jnp.float32)

    # deterministic "parameters" (torch Linear layout: weight = (out, in))
    scale = 1.0 / jnp.sqrt(hidden)
    wh = jax.random.normal(k_wh, (hidden, hidden), dtype=jnp.float32) * scale
    bh = jax.random.normal(k_bh, (hidden,), dtype=jnp.float32) * scale
    wm = jax.random.normal(k_wm, (hidden, hidden), dtype=jnp.float32) * scale
    bm = jax.random.normal(k_bm, (hidden,), dtype=jnp.float32) * scale
    vw = jax.random.normal(k_vw, (1, hidden), dtype=jnp.float32) * scale
    vb = jax.random.normal(k_vb, (1,), dtype=jnp.float32) * scale

    # mask out the last two positions of batch 1
    ce_mask = jnp.ones((bsz, seq), dtype=jnp.float32)
    ce_mask = ce_mask.at[1, seq - 2:].set(0.0)

    out = pointer_forward(hs, memory, ce_mask, wh, bh, wm, bm, vw, vb)
    out = jax.block_until_ready(out)
    ref = pointer_reference(hs, memory, ce_mask, wh, bh, wm, bm, vw, vb)
    assert out.shape == (bsz, L, query, seq)
    assert jnp.allclose(out, ref, atol=1e-4, rtol=1e-4), "mismatch vs reference (masked)"

    # also exercise the ce_mask=None path
    out2 = pointer_forward(hs, memory, None, wh, bh, wm, bm, vw, vb)
    out2 = jax.block_until_ready(out2)
    ref2 = pointer_reference(hs, memory, None, wh, bh, wm, bm, vw, vb)
    assert jnp.allclose(out2, ref2, atol=1e-4, rtol=1e-4), "mismatch vs reference (no mask)"

    print("KERNEL_OK")
</pallas_src>

<mosaic_0001>
module attributes {stable_mosaic.version = 11 : i64} {
  func.func @_pointer_kernel(%arg0: i32, %arg1: i32, %arg2: i32, %arg3: memref<1x16x128xf32, #tpu.memory_space<vmem>>, %arg4: memref<1x128x128xf32, #tpu.memory_space<vmem>>, %arg5: memref<1x1x128xf32, #tpu.memory_space<vmem>>, %arg6: memref<1x128xf32, #tpu.memory_space<vmem>>, %arg7: memref<1xf32, #tpu.memory_space<smem>>, %arg8: memref<1x16x128xf32, #tpu.memory_space<vmem>>, %arg9: memref<8x128x128xf32, #tpu.memory_space<vmem>>) attributes {dimension_semantics = [#tpu.dimension_semantics<parallel>, #tpu.dimension_semantics<parallel>, #tpu.dimension_semantics<parallel>], iteration_bounds = array<i64: 2, 1, 1>, scalar_prefetch = 0 : i64, scratch_operands = 1 : i64, tpu.core_type = #tpu.core_type<tc>, window_params = [{transform_indices = @transform_0, window_bounds = array<i64: 1, 16, 128>}, {transform_indices = @transform_1, window_bounds = array<i64: 1, 128, 128>}, {transform_indices = @transform_2, window_bounds = array<i64: 1, 1, 128>}, {pipeline_mode = #tpu.pipeline_mode<synchronous>, transform_indices = @transform_3, window_bounds = array<i64: 1, 128>}, {transform_indices = @transform_4, window_bounds = array<i64: 1>}, {transform_indices = @transform_5, window_bounds = array<i64: 1, 16, 128>}]} {
    %c0 = arith.constant 0 : index
    %c0_0 = arith.constant 0 : index
    %c0_1 = arith.constant 0 : index
    %0 = vector.load %arg5[%c0, %c0_0, %c0_1] : memref<1x1x128xf32, #tpu.memory_space<vmem>>, vector<1x1x128xf32>
    %1 = vector.shape_cast %0 : vector<1x1x128xf32> to vector<1x128xf32>
    %c0_2 = arith.constant 0 : index
    %2 = memref.load %arg7[%c0_2] : memref<1xf32, #tpu.memory_space<smem>>
    %c0_i32 = arith.constant 0 : i32
    %c2_i32 = arith.constant 2 : i32
    %3 = arith.addi %c0_i32, %c2_i32 : i32
    %c1_i32 = arith.constant 1 : i32
    scf.for %arg10 = %c0_i32 to %3 step %c1_i32  : i32 {
      %c8_i32 = arith.constant 8 : i32
      %4 = arith.muli %arg10, %c8_i32 : i32
      %5 = tpu.assume_multiple %4, 8 : i32
      %cst = arith.constant 0.000000e+00 : f32
      %6 = vector.broadcast %cst : f32 to vector<8x128x128xf32>
      %c0_4 = arith.constant 0 : index
      %c0_5 = arith.constant 0 : index
      %c0_6 = arith.constant 0 : index
      %7 = vector.load %arg9[%c0_4, %c0_5, %c0_6] : memref<8x128x128xf32, #tpu.memory_space<vmem>>, vector<8x128x128xf32>
      tpu.vector_store %arg9[%c0_4, %c0_5, %c0_6], %6 {strides = array<i32>} : memref<8x128x128xf32, #tpu.memory_space<vmem>>, vector<8x128x128xf32>,
      %c0_i32_7 = arith.constant 0 : i32
      %c128_i32 = arith.constant 128 : i32
      %8 = arith.muli %c0_i32_7, %c128_i32 : i32
      %9 = tpu.assume_multiple %8, 128 : i32
      %c0_8 = arith.constant 0 : index
      %10 = arith.index_cast %5 : i32 to index
      %11 = arith.index_cast %9 : i32 to index
      %12 = vector.load %arg3[%c0_8, %10, %11] : memref<1x16x128xf32, #tpu.memory_space<vmem>>, vector<1x8x128xf32>
      %13 = vector.shape_cast %12 : vector<1x8x128xf32> to vector<8x128xf32>
      %c0_9 = arith.constant 0 : index
      %c0_10 = arith.constant 0 : index
      %14 = arith.index_cast %9 : i32 to index
      %15 = vector.load %arg4[%c0_9, %c0_10, %14] : memref<1x128x128xf32, #tpu.memory_space<vmem>>, vector<1x128x128xf32>
      %16 = vector.shape_cast %15 : vector<1x128x128xf32> to vector<128x128xf32>
      %c0_11 = arith.constant 0 : index
      %17 = arith.index_cast %9 : i32 to index
      %18 = vector.load %arg6[%c0_11, %17] : memref<1x128xf32, #tpu.memory_space<vmem>>, vector<1x128xf32>
      %19 = vector.shape_cast %13 : vector<8x128xf32> to vector<8x1x128xf32>
      %20 = vector.shape_cast %16 : vector<128x128xf32> to vector<1x128x128xf32>
      %21 = vector.broadcast %19 : vector<8x1x128xf32> to vector<8x128x128xf32>
      %22 = vector.broadcast %20 : vector<1x128x128xf32> to vector<8x128x128xf32>
      %23 = arith.addf %21, %22 : vector<8x128x128xf32>
      %24 = math.tanh %23 : vector<8x128x128xf32>
      %c0_12 = arith.constant 0 : index
      %c0_13 = arith.constant 0 : index
      %c0_14 = arith.constant 0 : index
      %25 = vector.load %arg9[%c0_12, %c0_13, %c0_14] : memref<8x128x128xf32, #tpu.memory_space<vmem>>, vector<8x128x128xf32>
      %26 = vector.shape_cast %18 : vector<1x128xf32> to vector<1x1x128xf32>
      %27 = vector.broadcast %26 : vector<1x1x128xf32> to vector<8x128x128xf32>
      %28 = arith.mulf %24, %27 : vector<8x128x128xf32>
      %29 = arith.addf %25, %28 : vector<8x128x128xf32>
      %c0_15 = arith.constant 0 : index
      %c0_16 = arith.constant 0 : index
      %c0_17 = arith.constant 0 : index
      %30 = vector.load %arg9[%c0_15, %c0_16, %c0_17] : memref<8x128x128xf32, #tpu.memory_space<vmem>>, vector<8x128x128xf32>
      tpu.vector_store %arg9[%c0_15, %c0_16, %c0_17], %29 {strides = array<i32>} : memref<8x128x128xf32, #tpu.memory_space<vmem>>, vector<8x128x128xf32>,
      %c1_i32_18 = arith.constant 1 : i32
      %c0_19 = arith.constant 0 : index
      %c0_20 = arith.constant 0 : index
      %c0_21 = arith.constant 0 : index
      %31 = vector.load %arg9[%c0_19, %c0_20, %c0_21] : memref<8x128x128xf32, #tpu.memory_space<vmem>>, vector<8x128x128xf32>
      %cst_22 = arith.constant dense<0.000000e+00> : vector<8x128xf32>
      %32 = vector.multi_reduction <add>, %31, %cst_22 [2] : vector<8x128x128xf32> to vector<8x128xf32>
      %33 = vector.broadcast %2 : f32 to vector<8x128xf32>
      %34 = arith.addf %32, %33 : vector<8x128xf32>
      %cst_23 = arith.constant 0.000000e+00 : f32
      %35 = vector.broadcast %cst_23 : f32 to vector<1x128xf32>
      %36 = arith.cmpf ogt, %1, %35 : vector<1x128xf32>
      %cst_24 = arith.constant -1.000000e+06 : f32
      %37 = vector.shape_cast %36 : vector<1x128xi1> to vector<1x128xi1>
      %38 = vector.broadcast %37 : vector<1x128xi1> to vector<8x128xi1>
      %39 = vector.broadcast %cst_24 : f32 to vector<8x128xf32>
      %40 = arith.select %38, %34, %39 : vector<8x128xi1>, vector<8x128xf32>
      %c0_25 = arith.constant 0 : index
      %41 = arith.index_cast %5 : i32 to index
      %c0_26 = arith.constant 0 : index
      %42 = vector.load %arg8[%c0_25, %41, %c0_26] : memref<1x16x128xf32, #tpu.memory_space<vmem>>, vector<1x8x128xf32>
      %43 = vector.shape_cast %42 : vector<1x8x128xf32> to vector<8x128xf32>
      %44 = vector.shape_cast %40 : vector<8x128xf32> to vector<1x8x128xf32>
      tpu.vector_store %arg8[%c0_25, %41, %c0_26], %44 {strides = array<i32>} : memref<1x16x128xf32, #tpu.memory_space<vmem>>, vector<1x8x128xf32>,
    }
    %c2_i32_3 = arith.constant 2 : i32
    return
  }
  func.func @transform_0(%arg0: i32, %arg1: i32, %arg2: i32) -> (i32, i32, i32) {
    %c0_i32 = arith.constant 0 : i32
    %c0_i32_0 = arith.constant 0 : i32
    return %arg0, %arg1, %c0_i32 : i32, i32, i32
  }
  func.func @transform_1(%arg0: i32, %arg1: i32, %arg2: i32) -> (i32, i32, i32) {
    %c0_i32 = arith.constant 0 : i32
    %c0_i32_0 = arith.constant 0 : i32
    return %arg0, %arg2, %c0_i32 : i32, i32, i32
  }
  func.func @transform_2(%arg0: i32, %arg1: i32, %arg2: i32) -> (i32, i32, i32) {
    %c0_i32 = arith.constant 0 : i32
    %c0_i32_0 = arith.constant 0 : i32
    return %arg0, %c0_i32, %arg2 : i32, i32, i32
  }
  func.func @transform_3(%arg0: i32, %arg1: i32, %arg2: i32) -> (i32, i32) {
    %c0_i32 = arith.constant 0 : i32
    %c0_i32_0 = arith.constant 0 : i32
    %c0_i32_1 = arith.constant 0 : i32
    return %c0_i32, %c0_i32_0 : i32, i32
  }
  func.func @transform_4(%arg0: i32, %arg1: i32, %arg2: i32) -> i32 {
    %c0_i32 = arith.constant 0 : i32
    %c0_i32_0 = arith.constant 0 : i32
    return %c0_i32 : i32
  }
  func.func @transform_5(%arg0: i32, %arg1: i32, %arg2: i32) -> (i32, i32, i32) {
    %c0_i32 = arith.constant 0 : i32
    return %arg0, %arg1, %arg2 : i32, i32, i32
  }
}

</mosaic_0001>

<bundles_post_ra>
// kernel: tpu_custom_call.1
= control target key start
LH: loop header
LB: loop body
LE: loop exit
PB: predicated region body
PF: predicated region fallthrough
CT: control target
= control target key end

     0   :  { %s4620_s0 = inlined_call_operand.hbm [shape: f32[2,16,128], index: 0, kind: input, shape index: {}]   ;;  %s4621_s1 = inlined_call_operand.hbm [shape: f32[2,128,128], index: 1, kind: input, shape index: {}]   ;;  %s4622_s2 = inlined_call_operand.vmem [shape: f32[2,1,128], index: 2, kind: input, shape index: {}]   ;;  %s4623_s3 = inlined_call_operand.vmem [shape: f32[1,128], index: 3, kind: input, shape index: {}]   ;;  %s4624_s4 = inlined_call_operand.<no memory space> [shape: f32[1], index: 4, kind: input, shape index: {}]   ;;  %s4625_s5 = inlined_call_operand.hbm [shape: f32[2,16,128], index: 5, kind: output, shape index: {}]  }
   0x1   :  { %4627 = sst [smem:[#allocation14_spill]] %s4620_s0 }
   0x2   :  { %10 = sst [smem:[#allocation3]] %s4624_s4 }
   0x3   :  { %11 = vsyncpa [#allocation5], 0 }
   0x4   :  { %13 = vsyncpa [#allocation5 + $0x1], 0 }
   0x5   :  { %14 = vsyncpa [#allocation8], 0 }
   0x6   :  { %16 = vsyncpa [#allocation8 + $0x1], 0 }
   0x7   :  { %17 = vsyncpa [#allocation6], 0 }
   0x8   :  { %19 = vsyncpa [#allocation6 + $0x1], 0  ;;  %s3418_s20 = smov 0   ;;  %s3420_s21 = smov 0  }
   0x9   :  { %s3422_s22 = smov 0   ;;  %s3424_s23 = smov 0  }
   0xa   :  { %s3426_s24 = smov 0   ;;  %s3428_s25 = smov 0  }
   0xb LB: > { %s2849_s4 = sadd.s32 4294967295, %s3370_s25   ;;  %s2850_s26 = sadd.s32 4294967294, %s3370_s25   ;;  %s3370_s25 = sphi %s3428_s25, %s25_s25   ;;  %s3366_s24 = sphi %s3426_s24, %s4641_s24   ;;  %s3362_s23 = sphi %s3424_s23, %s4640_s23   ;;  %s3358_s22 = sphi %s3422_s22, %s4639_s22   ;;  %s3354_s21 = sphi %s3420_s21, %s4638_s21   ;;  %s3350_s20 = sphi %s3418_s20, %s4637_s20  }
   0xc   : > { %s44_s27 = sadd.s32 1, %s3366_s24  ;;  %s53_s28 = sadd.s32 1, %s3358_s22 }
   0xd   : > { %p46_p0 = scmp.ge.s32.totalorder %s44_s27, 2  ;;  %p60_p1 = scmp.ne.s32.totalorder %s3358_s22, %s3354_s21 }
   0xe   : > { %p61_p2 = scmp.eq.s32.totalorder %s3370_s25, 0  ;;  %p66_p3 = scmp.ne.s32.totalorder %s3354_s21, %s3350_s20 }
   0xf   : > { %s4643_s27 = smov (%p46_p0, %s44_s27), 0  ;;  %p67_p5 = scmp.eq.s32.totalorder %s2849_s4, 0 }
  0x10   : > { %4628 = sst [smem:[#allocation13_spill]] %s4643_s27  ;;  %p3459_p4 = por %p61_p2, %p60_p1 }
  0x11   : > { %s48_s30 = ssub.s32 %s3366_s24, %s4643_s27  ;;  %p192_p6 = scmp.eq.s32.totalorder %s2849_s4, 1 }
  0x12   : > { %p51_p7 = scmp.eq.s32.totalorder %s48_s30, 0  ;;  %p3465_p8 = por %p67_p5, %p66_p3 }
  0x13   : > { %p3469_p9 = por %p192_p6, %p60_p1  ;;  %p198_p10 = scmp.eq.s32.totalorder %s2850_s26, 1 }
  0x14   : > { %s3474_s8 = scalar_select %p51_p7, %s3358_s22, %s53_s28  }
  0x15   : > { %p3476_p11 = por %p198_p10, %p66_p3  ;;  %p2852_p12 = scmp.ge.s32.totalorder %s3370_s25, 2 }
  0x16   : > { %p2890_p13 = scmp.lt.s32.totalorder %s3370_s25, 2  ;;  %s3483_s10 = sand.u32 1, %s3358_s22  }
  0x17   : > { %s2853_s11 = sshll.u32 %s3483_s10, 4  ;;  %s2870_s12 = sshll.u32 %s3366_s24, 8 }
  0x18   : > { %s4633_s0 = sld [smem:[#allocation14_spill]]  ;;  %s228_s16 = scalar_lea.vmem [#allocation4], %s2853_s11 }
  0x19   : > { %s237_s17 = sshll.u32 %s228_s16, 4  ;;  %p3492_p0 = pnand %p2890_p13, %p3459_p4  ;;  %s238_s17 = int_to_ptr.vmem [resolvable:$true] %s237_s17 }
  0x1a   : > { %p2859_p1 = scmp.ge.s32.totalorder %s3370_s25, 1  ;;  %s225_s19 = scalar_lea.sflag [#allocation5], %s3483_s10 }
  0x1b   : > { %p3228_p2 = pneg %p3492_p0  ;;  %s3239_s4 = scalar_lea.vmem %s238_s17, 256 }
  0x1c   : > { %p3240_p3 = scmp.ne.s32.totalorder %s238_s17, %s3239_s4  ;;  %s3376_s26 = smov [#allocation4]  }
  0x1d   : > { %s3244_s28 = sshll.u32 %s3376_s26, 4  ;;  %s3245_s28 = int_to_ptr.vmem [resolvable:$false] %s3244_s28 }
  0x1e   : > { %s236_s15 = scalar_lea.hbm %s4633_s0, %s2870_s12  ;;  %p3242_p5 = pnand %p3240_p3, %p3228_p2 }
  0x1f   : > { %s3246_s29 = scalar_lea.vmem %s3245_s28, 512  ;;  %p3247_p4 = scmp.lt.s32.totalorder %s238_s17, %s3245_s28 }
  0x20   : > { %p3243_p6 = pneg %p3242_p5  ;;  %p3248_p7 = scmp.lt.s32.totalorder %s3246_s29, %s3239_s4 }
  0x22   : > { %p3249_p10 = por %p3248_p7, %p3247_p4 }
  0x24   : > { %p3250_p13 = pnand %p3249_p10, %p3243_p6 }
  0x26   : > { %3253 = shalt.err (!%p3250_p13)
}
  0x27   : > { %s3377_s30 = smov 128   ;;  %s3378_s11 = smov 8  }
  0x28   : > { %2882 = dma.hbm_to_vmem [thread:$0]  (!%p3492_p0), %s236_s15, 256, %s238_s17, %s225_s19, %s3377_s30, %s3377_s30, %s3378_s11  }
  0x29   : > { %p277_p3 = scmp.lt.s32.totalorder %s3370_s25, 3  ;;  %s2856_s12 = sshll.u32 %s3483_s10, 7 }
  0x2a   : > { %s2871_s13 = sshll.u32 %s3366_s24, 11  ;;  %s251_s28 = scalar_lea.vmem [#allocation7], %s2856_s12 }
  0x2b   : > { %p3510_p5 = pnand %p2859_p1, %p277_p3  ;;  %s259_s26 = scalar_lea.hbm %s4621_s1, %s2871_s13 }
  0x2c   : > { %s260_s29 = sshll.u32 %s251_s28, 4  ;;  %s248_s0 = scalar_lea.sflag [#allocation8], %s3483_s10  ;;  %s261_s29 = int_to_ptr.vmem [resolvable:$true] %s260_s29 }
  0x2d   : > { %s3267_s27 = scalar_lea.vmem %s261_s29, 2048  ;;  %s3379_s15 = smov [#allocation7]  }
  0x2e   : > { %p3268_p6 = scmp.ne.s32.totalorder %s261_s29, %s3267_s27  ;;  %s3272_s17 = sshll.u32 %s3379_s15, 4  ;;  %s3273_s17 = int_to_ptr.vmem [resolvable:$false] %s3272_s17 }
  0x2f   : > { %s3274_s19 = scalar_lea.vmem %s3273_s17, 4096  ;;  %p3275_p1 = scmp.lt.s32.totalorder %s261_s29, %s3273_s17 }
  0x30   : > { %p3270_p4 = pnand %p3268_p6, %p3228_p2  ;;  %p3276_p10 = scmp.lt.s32.totalorder %s3274_s19, %s3267_s27 }
  0x32   : > { %p3271_p7 = pneg %p3270_p4  ;;  %p3277_p13 = por %p3276_p10, %p3275_p1 }
  0x34   : > { %p3278_p3 = pnand %p3277_p13, %p3271_p7 }
  0x36   : > { %3281 = shalt.err (!%p3278_p3)
}
  0x37   : > { %2885 = dma.hbm_to_vmem [thread:$0]  (!%p3492_p0), %s259_s26, 2048, %s261_s29, %s248_s0, %s3377_s30, %s3377_s30, %s3378_s11  }
  0x38   : > { %281 = sbr.rel (%p3510_p5) target bundleno = 515 (0x203), region = 40  ;;  %s3526_s10 = sand.u32 (!%p3510_p5), 1, %s3354_s21  }
  0x39   : > { %s2860_s12 = sshll.u32 (!%p3510_p5), %s3526_s10, 4  ;;  %s284_s13 = scalar_lea.sflag (!%p3510_p5), [#allocation5], %s3526_s10 }
  0x3a   : > { %s3530_s16 = scalar_lea.vmem (!%p3510_p5), [#allocation4], %s2860_s12 }
  0x3d   : > { %3337 = dma.done.wait (%p3465_p8), %s284_s13, 256  }
  0x3e   : > { %3339 = vsyncadd (%p3465_p8), %s284_s13, 4294967040  ;;  %s2861_s0 = sshll.u32 %s3526_s10, 7  ;;  %s293_s27 = scalar_lea.sflag [#allocation8], %s3526_s10 }
  0x3f   : > { %s3538_s18 = scalar_lea.vmem [#allocation7], %s2861_s0 }
  0x40   : > { %3341 = dma.done.wait (%p3465_p8), %s293_s27, 2048  }
  0x41   : > { %3343 = vsyncadd (%p3465_p8), %s293_s27, 4294965248  ;;  %p336_p0 = scmp.lt.s32.totalorder %s3362_s23, 1  ;;  %s3545_s30 = sld [smem:[#allocation3]] }
  0x42   : > { %s3553_s28 = scalar_lea.vmem [#allocation9], %s2860_s12  ;;  %s3555_s29 = smov 0  }
  0x43   : > { %s337_s11 = scalar_select %p336_p0, %s3362_s23, 1 }
  0x45   : > { %s341_s26 = scalar_lea.vmem %s4622_s2, %s337_s11 }
  0x46   : > { %v3551_v0 = vld [vmem:[%s341_s26] sm:$0x1] }
  0x47 LB: >> { %v505_v1 = vlaneseq  ;;  %v3380_v2 = vmov 1966171168   ;;  %s2863_s6 = sshll.u32 %s3374_s29, 3  ;;  %v3581_v13 = vld [vmem:[%s3538_s18 + $0x10] sm:$0xff]  ;;  %v3584_v14 = vld [vmem:[%s3538_s18] sm:$0xff]  ;;  %v3587_v15 = vld [vmem:[%s3538_s18 + $0x18] sm:$0xff]  ;;  %s3374_s29 = sphi %s3555_s29, %s350_s29  }
  0x48   : >> { %v503_v3 = vunpack.c.l.s4 %v3380_v2  ;;  %s481_s15 = scalar_lea.vmem %s3530_s16, %s2863_s6 [#allocation4]  ;;  %v3598_v18 = vld [vmem:[%s3538_s18 + $0x8] sm:$0xff]  ;;  %v3610_v23 = vld [vmem:[%s3538_s18 + $0x20] sm:$0xff]  ;;  %v3619_v27 = vld [vmem:[%s3538_s18 + $0x38] sm:$0xff]  ;;  %vm2023_vm0 = vcmask 130112   ;;  %vm2030_vm1 = vcmask 195712   ;;  %vm2037_vm2 = vcmask 261312   ;;  %s2692_s0 = scalar_lea.vmem %s3553_s28, %s2863_s6 [#allocation9] }
  0x49   : >> { %v3562_v4 = vshrl.u32 %v505_v1, 7  ;;  %v482_v6 = vld [vmem:[%s481_s15] sm:$0xff]  ;;  %v3601_v19 = vld [vmem:[%s3538_s18 + $0x28] sm:$0xff]  ;;  %v3622_v28 = vld [vmem:[%s3538_s18 + $0x30] sm:$0xff]  ;;  %vm2044_vm3 = vcmask 326912   ;;  %vm2051_vm4 = vcmask 392512  }
  0x4a   : >> { %v504_v5 = vunpack.c.0.s8 %v503_v3  ;;  %v501_v8 = vcombine.high %v482_v6, %v482_v6  ;;  %v3629_v31 = vld [vmem:[%s3538_s18 + $0x48] sm:$0xff]  ;;  %v3632_v32 = vld [vmem:[%s3538_s18 + $0x40] sm:$0xff]  ;;  %v3639_v35 = vld [vmem:[%s3538_s18 + $0x58] sm:$0xff]  ;;  %vm2058_vm5 = vcmask 458112   ;;  %vm2065_vm6 = vcmask 523712   ;;  %s350_s29 = sadd.s32 1, %s3374_s29  }
  0x4b   : >> { %v3572_v10 = vsub.s32 0, %v3562_v4  ;;  %v3642_v36 = vld [vmem:[%s3538_s18 + $0x50] sm:$0xff]  ;;  %v3647_v37 = vld [vmem:[%s4623_s3] ss:$0 sm:$0xff]  ;;  %v3654_v42 = vld [vmem:[%s3538_s18 + $0x68] sm:$0xff]  ;;  %vm2072_vm7 = vcmask 589312  }
  0x4c   : >> { %v3568_v7 = vsub.s32 %v504_v5, %v3562_v4  ;;  %v3658_v45 = vld [vmem:[%s3538_s18 + $0x60] sm:$0xff]  ;;  %v3671_v55 = vld [vmem:[%s3538_s18 + $0x78] sm:$0xff]  ;;  %v3674_v57 = vld [vmem:[%s3538_s18 + $0x70] sm:$0xff]  ;;  %vm2079_vm8 = vcmask 654912   ;;  %vm2086_vm9 = vcmask 720512   ;;  %vm2093_vm10 = vcmask 786112  }
  0x4d   : >> { %vm2100_vm11 = vcmask 851712   ;;  %vm2107_vm12 = vcmask 917312   ;;  %vm2114_vm13 = vcmask 982912   ;;  %vm2121_vm14 = vcmask 1048512   ;;  %p347_p8 = scmp.ge.s32.totalorder %s350_s29, 2  }
  0x4e   : >> { %v508_v9 = vrot.slane %v482_v6, %v3568_v7  ;;  %v3575_v11 = vrot.slane %v501_v8, %v3568_v7  ;;  %vm2676_vm15 = vcmask 1041409   ;;  %s2872_s27 = sshll.u32 (%p347_p8), %s3362_s23, 8  ;;  %s2711_s26 = sshll.u32 (%p347_p8), %s3553_s28, 4  ;;  %s4572_s26 = int_to_ptr.vmem [resolvable:$true] %s2711_s26 }
  0x4f   : > { %s4569_s4 = scalar_lea.hbm (%p347_p8), %s4625_s5, %s2872_s27  ;;  %s2695_s6 = scalar_lea.sflag (%p347_p8), [#allocation6], %s3526_s10 }
  0x50   : >> { %v3578_v12 = vrot.slane %v508_v9, %v3568_v7  ;;  %v3591_v16 = vrot.slane %v3575_v11, %v3568_v7  ;;  %v516_v39 = vcombine.high %v508_v9, %v508_v9  ;;  %s3282_s15 = scalar_lea.vmem (%p347_p8), %s4572_s26, 256  ;;  %s3382_s16 = smov (%p347_p8), [#allocation9]  }
  0x51   : > { %p3283_p2 = scmp.ne.s32.totalorder (%p347_p8), %s4572_s26, %s3282_s15 }
  0x52   : >> { %v3595_v17 = vrot.slane %v3578_v12, %v3572_v10  ;;  %v3665_v51 = vrot.slane %v516_v39, %v3568_v7 }
  0x53   : > { %p3284_p5 = pnand (%p347_p8), %p3283_p2, %p3469_p9 }
  0x54   : >> { %v592_v20 = vadd.f32 %v3595_v17, %v3581_v13  ;;  %v590_v21 = vadd.f32 %v3595_v17, %v3584_v14  ;;  %v593_v22 = vadd.f32 %v3595_v17, %v3587_v15  ;;  %v591_v24 = vadd.f32 %v3595_v17, %v3598_v18 }
  0x55   : >> { %v595_v25 = vadd.f32 %v3595_v17, %v3601_v19  ;;  %v594_v26 = vadd.f32 %v3595_v17, %v3610_v23  ;;  %v597_v29 = vadd.f32 %v3595_v17, %v3619_v27  ;;  %v596_v30 = vadd.f32 %v3595_v17, %v3622_v28  ;;  %p3285_p6 = pneg (%p347_p8), %p3284_p5 }
  0x56   : >> { %2955 = vtanh.f32 %v592_v20  ;;  %v599_v33 = vadd.f32 %v3595_v17, %v3629_v31  ;;  %v598_v34 = vadd.f32 %v3595_v17, %v3632_v32  ;;  %v601_v38 = vadd.f32 %v3595_v17, %v3639_v35 }
  0x57   : >> { %2957 = vtanh.f32 %v590_v21  ;;  %v600_v41 = vadd.f32 %v3595_v17, %v3642_v36  ;;  %v603_v50 = vadd.f32 %v3595_v17, %v3654_v42  ;;  %v602_v54 = vadd.f32 %v3595_v17, %v3658_v45 }
  0x58   : >> { %2959 = vtanh.f32 %v593_v22  ;;  %v605_v59 = vadd.f32 %v3595_v17, %v3671_v55  ;;  %v3681_v60 = vrot.slane %v3665_v51, %v3572_v10  ;;  %v604_v63 = vadd.f32 %v3595_v17, %v3674_v57 }
  0x59   : >> { %2961 = vtanh.f32 %v591_v24 }
  0x5a   : >> { %2963 = vtanh.f32 %v595_v25  ;;  %v607_v5 = vadd.f32 %v3681_v60, %v3598_v18  ;;  %v606_v9 = vadd.f32 %v3681_v60, %v3584_v14  ;;  %v609_v21 = vadd.f32 %v3681_v60, %v3587_v15 }
  0x5b   : >> { %2965 = vtanh.f32 %v594_v26  ;;  %v608_v25 = vadd.f32 %v3681_v60, %v3581_v13 }
  0x5c   : >> { %2967 = vtanh.f32 %v597_v29 }
  0x5d   : >> { %2969 = vtanh.f32 %v596_v30  ;;  %v611_v30 = vadd.f32 %v3681_v60, %v3601_v19 }
  0x5e   : >> { %2971 = vtanh.f32 %v599_v33 }
  0x5f   : >> { %2973 = vtanh.f32 %v598_v34 }
  0x60   : >> { %2975 = vtanh.f32 %v601_v38  ;;  %v610_v38 = vadd.f32 %v3681_v60, %v3610_v23 }
  0x61   : >> { %2977 = vtanh.f32 %v600_v41  ;;  %v613_v41 = vadd.f32 %v3681_v60, %v3619_v27 }
  0x62   : >> { %2979 = vtanh.f32 %v603_v50 }
  0x63   : >> { %v2956_v40 = vpop.eup %2955  ;;  %2981 = vtanh.f32 %v602_v54 }
  0x64   : >> { %v2958_v43 = vpop.eup %2957  ;;  %v982_v44 = vmul.f32 %v2956_v40, %v3647_v37  ;;  %2983 = vtanh.f32 %v605_v59 }
  0x65   : >> { %v2960_v46 = vpop.eup %2959  ;;  %v980_v47 = vmul.f32 %v2958_v43, %v3647_v37  ;;  %2985 = vtanh.f32 %v604_v63 }
  0x66   : >> { %v2962_v48 = vpop.eup %2961  ;;  %1496 = vadd.xlane.f32.xlu1 %v982_v44  ;;  %v983_v49 = vmul.f32 %v2960_v46, %v3647_v37  ;;  %2987 = vtanh.f32 %v607_v5  ;;  %v612_v46 = vadd.f32 %v3681_v60, %v3622_v28  ;;  %v619_v5 = vadd.f32 %v3681_v60, %v3654_v42 }
  0x67   : >> { %v2964_v52 = vpop.eup %2963  ;;  %1492 = vadd.xlane.f32.xlu0 %v980_v47  ;;  %v981_v53 = vmul.f32 %v2962_v48, %v3647_v37  ;;  %2989 = vtanh.f32 %v606_v9 }
  0x68   : >> { %v2966_v56 = vpop.eup %2965  ;;  %v985_v58 = vmul.f32 %v2964_v52, %v3647_v37  ;;  %2991 = vtanh.f32 %v609_v21 }
  0x69   : >> { %v2968_v61 = vpop.eup %2967  ;;  %v984_v62 = vmul.f32 %v2966_v56, %v3647_v37  ;;  %2993 = vtanh.f32 %v608_v25 }
  0x6a   : >> { %1498 = vadd.xlane.f32.xlu1 %v983_v49  ;;  %v2970_v2 = vpop.eup %2969  ;;  %v987_v3 = vmul.f32 %v2968_v61, %v3647_v37  ;;  %2995 = vtanh.f32 %v611_v30  ;;  %v615_v49 = vadd.f32 %v3681_v60, %v3629_v31 }
  0x6b   : >> { %1494 = vadd.xlane.f32.xlu0 %v981_v53  ;;  %v2972_v6 = vpop.eup %2971  ;;  %v986_v8 = vmul.f32 %v2970_v2, %v3647_v37  ;;  %2997 = vtanh.f32 %v610_v38  ;;  %v614_v53 = vadd.f32 %v3681_v60, %v3632_v32  ;;  %v517_v2 = vcombine.high %v3575_v11, %v3575_v11 }
  0x6c   : >> { %v2974_v20 = vpop.eup %2973  ;;  %v989_v17 = vmul.f32 %v2972_v6, %v3647_v37  ;;  %2999 = vtanh.f32 %v613_v41  ;;  %v546_v6 = vcombine.high %v3578_v12, %v3578_v12 }
  0x6d   : >> { %v2976_v22 = vpop.eup %2975  ;;  %v988_v24 = vmul.f32 %v2974_v20, %v3647_v37  ;;  %3001 = vtanh.f32 %v612_v46  ;;  %v618_v20 = vadd.f32 %v3681_v60, %v3658_v45  ;;  %v3733_v11 = vrot.slane %v517_v2, %v3568_v7 }
  0x6e   : >> { %1502 = vadd.xlane.f32.xlu1 %v985_v58  ;;  %v2978_v26 = vpop.eup %2977  ;;  %v991_v29 = vmul.f32 %v2976_v22, %v3647_v37  ;;  %3003 = vtanh.f32 %v615_v49  ;;  %v617_v58 = vadd.f32 %v3681_v60, %v3639_v35  ;;  %v621_v22 = vadd.f32 %v3681_v60, %v3671_v55 }
  0x6f   : >> { %1500 = vadd.xlane.f32.xlu0 %v984_v62  ;;  %v2980_v33 = vpop.eup %2979  ;;  %v990_v34 = vmul.f32 %v2978_v26, %v3647_v37  ;;  %3005 = vtanh.f32 %v614_v53  ;;  %v616_v62 = vadd.f32 %v3681_v60, %v3642_v36  ;;  %v3739_v12 = vrot.slane %v546_v6, %v3572_v10 }
  0x70   : >> { %v2982_v39 = vpop.eup %2981  ;;  %v993_v40 = vmul.f32 %v2980_v33, %v3647_v37  ;;  %3007 = vtanh.f32 %v617_v58  ;;  %v620_v7 = vadd.f32 %v3681_v60, %v3674_v57 }
  0x71   : >> { %v2984_v43 = vpop.eup %2983  ;;  %v992_v44 = vmul.f32 %v2982_v39, %v3647_v37  ;;  %3009 = vtanh.f32 %v616_v62  ;;  %v623_v30 = vadd.f32 %v3739_v12, %v3598_v18  ;;  %v622_v38 = vadd.f32 %v3739_v12, %v3584_v14 }
  0x72   : >> { %1506 = vadd.xlane.f32.xlu1 %v987_v3  ;;  %v2986_v47 = vpop.eup %2985  ;;  %v995_v48 = vmul.f32 %v2984_v43, %v3647_v37  ;;  %3011 = vtanh.f32 %v619_v5  ;;  %v631_v2 = vadd.f32 %v3739_v12, %v3629_v31  ;;  %v630_v6 = vadd.f32 %v3739_v12, %v3632_v32 }
  0x73   : >> { %1504 = vadd.xlane.f32.xlu0 %v986_v8  ;;  %v2988_v50 = vpop.eup %2987  ;;  %v994_v52 = vmul.f32 %v2986_v47, %v3647_v37  ;;  %3013 = vtanh.f32 %v618_v20  ;;  %v633_v20 = vadd.f32 %v3739_v12, %v3639_v35 }
  0x74   : >> { %v2990_v54 = vpop.eup %2989  ;;  %v997_v56 = vmul.f32 %v2988_v50, %v3647_v37  ;;  %3015 = vtanh.f32 %v621_v22  ;;  %v632_v22 = vadd.f32 %v3739_v12, %v3642_v36 }
  0x75   : >> { %v2992_v59 = vpop.eup %2991  ;;  %v996_v61 = vmul.f32 %v2990_v54, %v3647_v37  ;;  %3017 = vtanh.f32 %v620_v7  ;;  %v635_v7 = vadd.f32 %v3739_v12, %v3654_v42 }
  0x76   : >> { %1510 = vadd.xlane.f32.xlu1 %v989_v17  ;;  %v2994_v63 = vpop.eup %2993  ;;  %v999_v3 = vmul.f32 %v2992_v59, %v3647_v37  ;;  %3019 = vtanh.f32 %v623_v30 }
  0x77   : >> { %1508 = vadd.xlane.f32.xlu0 %v988_v24  ;;  %v2996_v8 = vpop.eup %2995  ;;  %v998_v9 = vmul.f32 %v2994_v63, %v3647_v37  ;;  %3021 = vtanh.f32 %v622_v38 }
  0x78   : >> { %v2998_v17 = vpop.eup %2997  ;;  %v1001_v21 = vmul.f32 %v2996_v8, %v3647_v37 }
  0x79   : >> { %v3000_v24 = vpop.eup %2999  ;;  %v1000_v25 = vmul.f32 %v2998_v17, %v3647_v37 }
  0x7a   : >> { %1514 = vadd.xlane.f32.xlu1 %v991_v29  ;;  %v3002_v26 = vpop.eup %3001  ;;  %v1003_v29 = vmul.f32 %v3000_v24, %v3647_v37 }
  0x7b   : >> { %1512 = vadd.xlane.f32.xlu0 %v990_v34  ;;  %v3004_v33 = vpop.eup %3003  ;;  %v1002_v34 = vmul.f32 %v3002_v26, %v3647_v37  ;;  %v548_v26 = vcombine.high %v3665_v51, %v3665_v51 }
  0x7c   : >> { %v3006_v39 = vpop.eup %3005  ;;  %v1005_v60 = vmul.f32 %v3004_v33, %v3647_v37  ;;  %v634_v33 = vadd.f32 %v3739_v12, %v3658_v45 }
  0x7d   : >> { %v3008_v41 = vpop.eup %3007  ;;  %v1004_v43 = vmul.f32 %v3006_v39, %v3647_v37  ;;  %v637_v39 = vadd.f32 %v3739_v12, %v3671_v55 }
  0x7e   : >> { %1518 = vadd.xlane.f32.xlu1 %v993_v40  ;;  %v625_v40 = vadd.f32 %v3739_v12, %v3587_v15  ;;  %v3010_v46 = vpop.eup %3009  ;;  %v1007_v47 = vmul.f32 %v3008_v41, %v3647_v37  ;;  %v636_v41 = vadd.f32 %v3739_v12, %v3674_v57 }
  0x7f   : >> { %1516 = vadd.xlane.f32.xlu0 %v992_v44  ;;  %v624_v44 = vadd.f32 %v3739_v12, %v3581_v13  ;;  %v3012_v49 = vpop.eup %3011  ;;  %v1006_v50 = vmul.f32 %v3010_v46, %v3647_v37 }
  0x80   : >> { %3023 = vtanh.f32 %v625_v40  ;;  %v3014_v53 = vpop.eup %3013  ;;  %v1009_v54 = vmul.f32 %v3012_v49, %v3647_v37 }
  0x81   : >> { %3025 = vtanh.f32 %v624_v44  ;;  %v3016_v58 = vpop.eup %3015  ;;  %v1008_v59 = vmul.f32 %v3014_v53, %v3647_v37 }
  0x82   : >> { %1522 = vadd.xlane.f32.xlu1 %v995_v48  ;;  %v627_v48 = vadd.f32 %v3739_v12, %v3601_v19  ;;  %v3018_v62 = vpop.eup %3017  ;;  %v1011_v63 = vmul.f32 %v3016_v58, %v3647_v37 }
  0x83   : >> { %1520 = vadd.xlane.f32.xlu0 %v994_v52  ;;  %v626_v52 = vadd.f32 %v3739_v12, %v3610_v23  ;;  %v1010_v5 = vmul.f32 %v3018_v62, %v3647_v37 }
  0x84   : >> { %3027 = vtanh.f32 %v627_v48 }
  0x85   : >> { %3029 = vtanh.f32 %v626_v52 }
  0x86   : >> { %1526 = vadd.xlane.f32.xlu1 %v997_v56  ;;  %v629_v56 = vadd.f32 %v3739_v12, %v3619_v27 }
  0x87   : >> { %1524 = vadd.xlane.f32.xlu0 %v996_v61  ;;  %v628_v61 = vadd.f32 %v3739_v12, %v3622_v28 }
  0x88   : >> { %3031 = vtanh.f32 %v629_v56 }
  0x89   : >> { %3033 = vtanh.f32 %v628_v61 }
  0x8a   : >> { %1530 = vadd.xlane.f32.xlu1 %v999_v3  ;;  %v3020_v3 = vpop.eup %3019  ;;  %3035 = vtanh.f32 %v631_v2 }
  0x8b   : >> { %1528 = vadd.xlane.f32.xlu0 %v998_v9  ;;  %v3022_v8 = vpop.eup %3021  ;;  %v1013_v9 = vmul.f32 %v3020_v3, %v3647_v37  ;;  %3037 = vtanh.f32 %v630_v6 }
  0x8c   : >> { %3039 = vtanh.f32 %v633_v20 }
  0x8d   : >> { %v3024_v17 = vpop.eup %3023  ;;  %3041 = vtanh.f32 %v632_v22 }
  0x8e   : >> { %1534 = vadd.xlane.f32.xlu1 %v1001_v21  ;;  %v1012_v21 = vmul.f32 %v3022_v8, %v3647_v37  ;;  %v3026_v24 = vpop.eup %3025  ;;  %3043 = vtanh.f32 %v635_v7 }
  0x8f   : >> { %1532 = vadd.xlane.f32.xlu0 %v1000_v25  ;;  %v1015_v25 = vmul.f32 %v3024_v17, %v3647_v37  ;;  %v1014_v30 = vmul.f32 %v3026_v24, %v3647_v37  ;;  %3045 = vtanh.f32 %v634_v33 }
  0x90   : >> { %3047 = vtanh.f32 %v637_v39 }
  0x91   : >> { %3049 = vtanh.f32 %v636_v41 }
  0x92   : >> { %1538 = vadd.xlane.f32.xlu1 %v1003_v29  ;;  %v3028_v29 = vpop.eup %3027 }
  0x93   : >> { %1536 = vadd.xlane.f32.xlu0 %v1002_v34  ;;  %v3030_v34 = vpop.eup %3029  ;;  %v1017_v38 = vmul.f32 %v3028_v29, %v3647_v37 }
  0x94   : >> { %v1016_v40 = vmul.f32 %v3030_v34, %v3647_v37 }
  0x95   : >> { %v3032_v51 = vpop.eup %3031 }
  0x96   : >> { %1542 = vadd.xlane.f32.xlu1 %v1005_v60  ;;  %v3792_v60 = vrot.slane %v548_v26, %v3572_v10  ;;  %v1019_v44 = vmul.f32 %v3032_v51, %v3647_v37 }
  0x97   : >> { %1540 = vadd.xlane.f32.xlu0 %v1004_v43  ;;  %v3034_v43 = vpop.eup %3033 }
  0x98   : >> { %v639_v46 = vadd.f32 %v3792_v60, %v3598_v18  ;;  %v1018_v48 = vmul.f32 %v3034_v43, %v3647_v37  ;;  %v638_v49 = vadd.f32 %v3792_v60, %v3584_v14  ;;  %v641_v52 = vadd.f32 %v3792_v60, %v3587_v15 }
  0x99   : >> { %v640_v56 = vadd.f32 %v3792_v60, %v3581_v13  ;;  %v643_v61 = vadd.f32 %v3792_v60, %v3601_v19  ;;  %v642_v2 = vadd.f32 %v3792_v60, %v3610_v23  ;;  %v645_v6 = vadd.f32 %v3792_v60, %v3619_v27 }
  0x9a   : >> { %1546 = vadd.xlane.f32.xlu1 %v1007_v47  ;;  %v3036_v47 = vpop.eup %3035  ;;  %3051 = vtanh.f32 %v639_v46  ;;  %v644_v20 = vadd.f32 %v3792_v60, %v3622_v28  ;;  %v647_v22 = vadd.f32 %v3792_v60, %v3629_v31  ;;  %v646_v7 = vadd.f32 %v3792_v60, %v3632_v32 }
  0x9b   : >> { %1544 = vadd.xlane.f32.xlu0 %v1006_v50  ;;  %v3038_v50 = vpop.eup %3037  ;;  %v1021_v12 = vmul.f32 %v3036_v47, %v3647_v37  ;;  %3053 = vtanh.f32 %v638_v49  ;;  %v3844_v49 = vrot.slane %v3591_v16, %v3572_v10 }
  0x9c   : >> { %v3040_v53 = vpop.eup %3039  ;;  %3055 = vtanh.f32 %v641_v52  ;;  %v652_v52 = vadd.f32 %v3792_v60, %v3674_v57 }
  0x9d   : >> { %v3042_v58 = vpop.eup %3041  ;;  %3057 = vtanh.f32 %v640_v56  ;;  %v655_v56 = vadd.f32 %v3844_v49, %v3598_v18 }
  0x9e   : >> { %1550 = vadd.xlane.f32.xlu1 %v1009_v54  ;;  %v1020_v54 = vmul.f32 %v3038_v50, %v3647_v37  ;;  %v3044_v62 = vpop.eup %3043  ;;  %3059 = vtanh.f32 %v643_v61  ;;  %v654_v61 = vadd.f32 %v3844_v49, %v3584_v14 }
  0x9f   : >> { %1548 = vadd.xlane.f32.xlu0 %v1008_v59  ;;  %v1023_v59 = vmul.f32 %v3040_v53, %v3647_v37  ;;  %v3046_v3 = vpop.eup %3045  ;;  %3061 = vtanh.f32 %v642_v2 }
  0xa0   : >> { %v3048_v8 = vpop.eup %3047  ;;  %3063 = vtanh.f32 %v645_v6 }
  0xa1   : >> { %v3050_v17 = vpop.eup %3049  ;;  %3065 = vtanh.f32 %v644_v20 }
  0xa2   : >> { %1554 = vadd.xlane.f32.xlu1 %v1011_v63  ;;  %v1022_v63 = vmul.f32 %v3042_v58, %v3647_v37  ;;  %3067 = vtanh.f32 %v647_v22 }
  0xa3   : >> { %1552 = vadd.xlane.f32.xlu0 %v1010_v5  ;;  %v1025_v5 = vmul.f32 %v3044_v62, %v3647_v37  ;;  %3069 = vtanh.f32 %v646_v7 }
  0xa6   : >> { %1558 = vadd.xlane.f32.xlu1 %v1013_v9  ;;  %v1024_v9 = vmul.f32 %v3046_v3, %v3647_v37 }
  0xa7   : >> { %1556 = vadd.xlane.f32.xlu0 %v1012_v21  ;;  %v1027_v21 = vmul.f32 %v3048_v8, %v3647_v37  ;;  %v3052_v24 = vpop.eup %3051 }
  0xa8   : >> { %v3054_v26 = vpop.eup %3053  ;;  %v1029_v29 = vmul.f32 %v3052_v24, %v3647_v37 }
  0xa9   : >> { %v3056_v33 = vpop.eup %3055  ;;  %v1028_v34 = vmul.f32 %v3054_v26, %v3647_v37  ;;  %v660_v26 = vadd.f32 %v3844_v49, %v3622_v28 }
  0xaa   : >> { %1562 = vadd.xlane.f32.xlu1 %v1015_v25  ;;  %v1026_v25 = vmul.f32 %v3050_v17, %v3647_v37  ;;  %v3058_v39 = vpop.eup %3057  ;;  %v1031_v51 = vmul.f32 %v3056_v33, %v3647_v37  ;;  %v663_v33 = vadd.f32 %v3844_v49, %v3629_v31 }
  0xab   : >> { %1560 = vadd.xlane.f32.xlu0 %v1014_v30  ;;  %v649_v30 = vadd.f32 %v3792_v60, %v3639_v35  ;;  %v3060_v41 = vpop.eup %3059  ;;  %v1030_v43 = vmul.f32 %v3058_v39, %v3647_v37 }
  0xac   : >> { %v3062_v46 = vpop.eup %3061  ;;  %v1033_v47 = vmul.f32 %v3060_v41, %v3647_v37  ;;  %v664_v41 = vadd.f32 %v3844_v49, %v3642_v36 }
  0xad   : >> { %3071 = vtanh.f32 %v649_v30  ;;  %v3064_v50 = vpop.eup %3063 }
  0xae   : >> { %1566 = vadd.xlane.f32.xlu1 %v1017_v38  ;;  %v648_v38 = vadd.f32 %v3792_v60, %v3642_v36  ;;  %v3066_v53 = vpop.eup %3065 }
  0xaf   : >> { %1564 = vadd.xlane.f32.xlu0 %v1016_v40  ;;  %v651_v40 = vadd.f32 %v3792_v60, %v3654_v42  ;;  %v3068_v58 = vpop.eup %3067 }
  0xb0   : >> { %3073 = vtanh.f32 %v648_v38  ;;  %v3070_v62 = vpop.eup %3069  ;;  %v662_v38 = vadd.f32 %v3844_v49, %v3632_v32 }
  0xb1   : >> { %3075 = vtanh.f32 %v651_v40  ;;  %v1036_v3 = vmul.f32 %v3070_v62, %v3647_v37 }
  0xb2   : >> { %1570 = vadd.xlane.f32.xlu1 %v1019_v44  ;;  %v650_v44 = vadd.f32 %v3792_v60, %v3658_v45 }
  0xb3   : >> { %1568 = vadd.xlane.f32.xlu0 %v1018_v48  ;;  %v653_v48 = vadd.f32 %v3792_v60, %v3671_v55  ;;  %v1037_v60 = vmul.f32 %v3068_v58, %v3647_v37 }
  0xb4   : >> { %3077 = vtanh.f32 %v650_v44  ;;  %v3886_v44 = vand.u32 127, %v505_v1 }
  0xb5   : >> { %3079 = vtanh.f32 %v653_v48  ;;  %v666_v48 = vadd.f32 %v3844_v49, %v3658_v45  ;;  %v547_v45 = vcombine.high %v3591_v16, %v3591_v16 }
  0xb6   : >> { %1574 = vadd.xlane.f32.xlu1 %v1021_v12  ;;  %v1032_v12 = vmul.f32 %v3062_v46, %v3647_v37  ;;  %3081 = vtanh.f32 %v652_v52  ;;  %v667_v46 = vadd.f32 %v3844_v49, %v3654_v42  ;;  %v2032_v1 = vadd.s32 4294967272, %v3886_v44 }
  0xb7   : >> { %1572 = vadd.xlane.f32.xlu0 %v1020_v54  ;;  %v1035_v54 = vmul.f32 %v3064_v50, %v3647_v37  ;;  %3083 = vtanh.f32 %v655_v56  ;;  %v2025_v50 = vadd.s32 4294967280, %v3886_v44  ;;  %v669_v52 = vadd.f32 %v3844_v49, %v3671_v55 }
  0xb8   : >> { %3085 = vtanh.f32 %v654_v61  ;;  %v2039_v58 = vadd.s32 4294967264, %v3886_v44  ;;  %v668_v55 = vadd.f32 %v3844_v49, %v3674_v57  ;;  %v3911_v61 = vstv %s3545_s30 }
  0xb9   : >> { %v2046_v62 = vadd.s32 4294967256, %v3886_v44  ;;  %v3919_v16 = vsub.s32 %v3886_v44, %v3562_v4 }
  0xba   : >> { %1578 = vadd.xlane.f32.xlu1 %v1023_v59  ;;  %v1034_v59 = vmul.f32 %v3066_v53, %v3647_v37  ;;  %v3072_v2 = vpop.eup %3071  ;;  %v3902_v53 = vrot.slane %v3733_v11, %v3572_v10 }
  0xbb   : >> { %1576 = vadd.xlane.f32.xlu0 %v1022_v63  ;;  %v657_v63 = vadd.f32 %v3844_v49, %v3587_v15  ;;  %v1039_v8 = vmul.f32 %v3072_v2, %v3647_v37 }
  0xbd   : >> { %v3074_v6 = vpop.eup %3073  ;;  %3087 = vtanh.f32 %v657_v63  ;;  %v3922_v63 = vsub.s32 %v2032_v1, %v3562_v4 }
  0xbe   : >> { %1582 = vadd.xlane.f32.xlu1 %v1025_v5  ;;  %v656_v5 = vadd.f32 %v3844_v49, %v3581_v13  ;;  %v3076_v20 = vpop.eup %3075  ;;  %v1038_v17 = vmul.f32 %v3074_v6, %v3647_v37 }
  0xbf   : >> { %1580 = vadd.xlane.f32.xlu0 %v1024_v9  ;;  %v659_v9 = vadd.f32 %v3844_v49, %v3601_v19  ;;  %v1041_v24 = vmul.f32 %v3076_v20, %v3647_v37  ;;  %v670_v20 = vadd.f32 %v3902_v53, %v3584_v14 }
  0xc0   : >> { %3089 = vtanh.f32 %v656_v5 }
  0xc1   : >> { %v3078_v22 = vpop.eup %3077  ;;  %3091 = vtanh.f32 %v659_v9  ;;  %v3935_v9 = vsub.s32 %v2039_v58, %v3562_v4 }
  0xc2   : >> { %1586 = vadd.xlane.f32.xlu1 %v1027_v21  ;;  %v658_v21 = vadd.f32 %v3844_v49, %v3610_v23  ;;  %v3080_v7 = vpop.eup %3079  ;;  %v1040_v19 = vmul.f32 %v3078_v22, %v3647_v37 }
  0xc3   : >> { %1584 = vadd.xlane.f32.xlu0 %v1026_v25  ;;  %v661_v25 = vadd.f32 %v3844_v49, %v3619_v27  ;;  %v1043_v30 = vmul.f32 %v3080_v7, %v3647_v37 }
  0xc4   : >> { %3093 = vtanh.f32 %v658_v21 }
  0xc5   : >> { %3095 = vtanh.f32 %v661_v25  ;;  %v2053_v25 = vadd.s32 4294967248, %v3886_v44 }
  0xc6   : >> { %1590 = vadd.xlane.f32.xlu1 %v1029_v29  ;;  %v3082_v29 = vpop.eup %3081  ;;  %3097 = vtanh.f32 %v660_v26  ;;  %v2067_v26 = vadd.s32 4294967232, %v3886_v44 }
  0xc7   : >> { %1588 = vadd.xlane.f32.xlu0 %v1028_v34  ;;  %v3084_v34 = vpop.eup %3083  ;;  %v1042_v27 = vmul.f32 %v3082_v29, %v3647_v37  ;;  %3099 = vtanh.f32 %v663_v33  ;;  %v549_v29 = vcombine.high %v3733_v11, %v3733_v11  ;;  %v672_v11 = vadd.f32 %v3902_v53, %v3581_v13 }
  0xc8   : >> { %v3086_v39 = vpop.eup %3085  ;;  %v1045_v28 = vmul.f32 %v3084_v34, %v3647_v37  ;;  %3101 = vtanh.f32 %v662_v38 }
  0xc9   : >> { %v1044_v31 = vmul.f32 %v3086_v39, %v3647_v37 }
  0xca   : >> { %1594 = vadd.xlane.f32.xlu1 %v1031_v51  ;;  %v665_v51 = vadd.f32 %v3844_v49, %v3639_v35  ;;  %v3088_v40 = vpop.eup %3087  ;;  %v671_v49 = vadd.f32 %v3902_v53, %v3598_v18 }
  0xcb   : >> { %1592 = vadd.xlane.f32.xlu0 %v1030_v43  ;;  %v1047_v32 = vmul.f32 %v3088_v40, %v3647_v37 }
  0xcc   : >> { %3103 = vtanh.f32 %v665_v51 }
  0xcd   : >> { %v3090_v43 = vpop.eup %3089  ;;  %3105 = vtanh.f32 %v664_v41  ;;  %v3959_v41 = vsub.s32 %v2053_v25, %v3562_v4 }
  0xce   : >> { %1598 = vadd.xlane.f32.xlu1 %v1033_v47  ;;  %v3092_v35 = vpop.eup %3091  ;;  %v1046_v47 = vmul.f32 %v3090_v43, %v3647_v37  ;;  %3107 = vtanh.f32 %v667_v46  ;;  %v2074_v43 = vadd.s32 4294967224, %v3886_v44 }
  0xcf   : >> { %1596 = vadd.xlane.f32.xlu0 %v1032_v12  ;;  %v2018_v12 = vadd.s32 4294967288, %v3886_v44  ;;  %v1049_v42 = vmul.f32 %v3092_v35, %v3647_v37  ;;  %3109 = vtanh.f32 %v666_v48  ;;  %v3967_v35 = vsub.s32 %v2067_v26, %v3562_v4 }
  0xd0   : >> { %3111 = vtanh.f32 %v669_v52 }
  0xd1   : >> { %v3094_v36 = vpop.eup %3093  ;;  %v3925_v2 = vsub.s32 %v2018_v12, %v3562_v4  ;;  %3113 = vtanh.f32 %v668_v55  ;;  %v3982_v55 = vsub.s32 %v2074_v43, %v3562_v4 }
  0xd2   : >> { %1602 = vadd.xlane.f32.xlu1 %v1035_v54  ;;  %v3096_v54 = vpop.eup %3095  ;;  %v1048_v56 = vmul.f32 %v3094_v36, %v3647_v37  ;;  %3115 = vtanh.f32 %v671_v49 }
  0xd3   : >> { %1600 = vadd.xlane.f32.xlu0 %v1034_v59  ;;  %v3098_v59 = vpop.eup %3097  ;;  %v1051_v57 = vmul.f32 %v3096_v54, %v3647_v37  ;;  %3117 = vtanh.f32 %v670_v20 }
  0xd4   : >> { %v3100_v5 = vpop.eup %3099 }
  0xd5   : >> { %v1053_v33 = vmul.f32 %v3100_v5, %v3647_v37 }
  0xd6   : >> { %1606 = vadd.xlane.f32.xlu1 %v1037_v60  ;;  %v3915_v60 = vsub.s32 %v2025_v50, %v3562_v4  ;;  %v673_v50 = vadd.f32 %v3902_v53, %v3587_v15  ;;  %v2088_v15 = vadd.s32 4294967208, %v3886_v44 }
  0xd7   : >> { %1604 = vadd.xlane.f32.xlu0 %v1036_v3  ;;  %v3931_v3 = vrot.slane %v547_v45, %v3572_v10 }
  0xd9   : >> { %v686_v34 = vadd.f32 %v3931_v3, %v3584_v14  ;;  %v687_v45 = vadd.f32 %v3931_v3, %v3598_v18  ;;  %v688_v49 = vadd.f32 %v3931_v3, %v3581_v13 }
  0xda   : >> { %1610 = vadd.xlane.f32.xlu1 %v1039_v8  ;;  %v1050_v8 = vmul.f32 %v3098_v59, %v3647_v37  ;;  %v2081_v59 = vadd.s32 4294967216, %v3886_v44 }
  0xdb   : >> { %1608 = vadd.xlane.f32.xlu0 %v1038_v17  ;;  %v3102_v17 = vpop.eup %3101  ;;  %3119 = vtanh.f32 %v686_v34  ;;  %v674_v34 = vadd.f32 %v3902_v53, %v3610_v23 }
  0xdc   : >> { %3121 = vtanh.f32 %v672_v11  ;;  %v4000_v26 = vsub.s32 %v2081_v59, %v3562_v4  ;;  %v3212_v59 = vld [vmem:[%s3538_s18 + $0x18] sm:$0xff] }
  0xdd   : >> { %3123 = vtanh.f32 %v673_v50 }
  0xde   : >> { %1614 = vadd.xlane.f32.xlu1 %v1041_v24  ;;  %v3941_v24 = vsub.s32 %v2046_v62, %v3562_v4  ;;  %3125 = vtanh.f32 %v687_v45 }
  0xdf   : >> { %1612 = vadd.xlane.f32.xlu0 %v1040_v19  ;;  %v2060_v19 = vadd.s32 4294967240, %v3886_v44 }
  0xe1   : >> { %v3964_v46 = vsub.s32 %v2060_v19, %v3562_v4 }
  0xe2   : >> { %1618 = vadd.xlane.f32.xlu1 %v1043_v30 }
  0xe3   : >> { %1616 = vadd.xlane.f32.xlu0 %v1042_v27  ;;  %v3104_v27 = vpop.eup %3103 }
  0xe4   : >> { %v3106_v51 = vpop.eup %3105  ;;  %v1055_v36 = vmul.f32 %v3104_v27, %v3647_v37 }
  0xe5   : >> { %v3108_v1 = vpop.eup %3107 }
  0xe6   : >> { %1622 = vadd.xlane.f32.xlu1 %v1045_v28  ;;  %v1052_v28 = vmul.f32 %v3102_v17, %v3647_v37  ;;  %v3110_v54 = vpop.eup %3109  ;;  %v1057_v20 = vmul.f32 %v3108_v1, %v3647_v37 }
  0xe7   : >> { %1620 = vadd.xlane.f32.xlu0 %v1044_v31  ;;  %v3112_v17 = vpop.eup %3111  ;;  %v1056_v13 = vmul.f32 %v3110_v54, %v3647_v37 }
  0xea   : >> { %1626 = vadd.xlane.f32.xlu1 %v1047_v32 }
  0xeb   : >> { %1624 = vadd.xlane.f32.xlu0 %v1046_v47  ;;  %v3970_v47 = vrot.slane %v549_v29, %v3572_v10 }
  0xed   : >> { %v702_v5 = vadd.f32 %v3970_v47, %v3584_v14  ;;  %v703_v23 = vadd.f32 %v3970_v47, %v3598_v18 }
  0xee   : >> { %1630 = vadd.xlane.f32.xlu1 %v1049_v42  ;;  %v1054_v42 = vmul.f32 %v3106_v51, %v3647_v37 }
  0xef   : >> { %1628 = vadd.xlane.f32.xlu0 %v1048_v56  ;;  %v1497_v6 = vpop.xlane.xlu1 %1496  ;;  %3127 = vtanh.f32 %v702_v5 }
  0xf0   : >> { %v1751_v21 = vadd.f32 %v3911_v61, %v1497_v6  ;;  %v1493_v22 = vpop.xlane.xlu0 %1492  ;;  %3129 = vtanh.f32 %v688_v49 }
  0xf1   : >> { %v1749_v7 = vadd.f32 %v3911_v61, %v1493_v22  ;;  %3131 = vtanh.f32 %v674_v34 }
  0xf2   : >> { %v2029_v30 = vrot.slane %v1751_v21, %v3915_v60  ;;  %1634 = vadd.xlane.f32.xlu1 %v1051_v57  ;;  %3133 = vtanh.f32 %v703_v23 }
  0xf3   : >> { %v2017_v38 = vrot.slane %v1749_v7, %v3919_v16  ;;  %1632 = vadd.xlane.f32.xlu0 %v1050_v8  ;;  %v1499_v39 = vpop.xlane.xlu1 %1498  ;;  %v3114_v7 = vpop.eup %3113 }
  0xf4   : >> { %v1752_v40 = vadd.f32 %v3911_v61, %v1499_v39  ;;  %v1495_v31 = vpop.xlane.xlu0 %1494  ;;  %v1059_v39 = vmul.f32 %v3112_v17, %v3647_v37 }
  0xf5   : >> { %v1750_v32 = vadd.f32 %v3911_v61, %v1495_v31 }
  0xf6   : >> { %v2036_v48 = vrot.slane %v1752_v40, %v3922_v63  ;;  %1638 = vadd.xlane.f32.xlu1 %v1053_v33  ;;  %v4005_v33 = vsub.s32 %v2088_v15, %v3562_v4  ;;  %v1058_v40 = vmul.f32 %v3114_v7, %v3647_v37 }
  0xf7   : >> { %v2022_v12 = vrot.slane %v1750_v32, %v3925_v2  ;;  %1636 = vadd.xlane.f32.xlu0 %v1052_v28  ;;  %v1503_v52 = vpop.xlane.xlu1 %1502  ;;  %v3116_v28 = vpop.eup %3115 }
  0xf8   : >> { %v1754_v56 = vadd.f32 %v3911_v61, %v1503_v52  ;;  %v1501_v58 = vpop.xlane.xlu0 %1500  ;;  %v3118_v31 = vpop.eup %3117  ;;  %v1061_v45 = vmul.f32 %v3116_v28, %v3647_v37 }
  0xf9   : >> { %v2024_v62 = vsel %vm2023_vm0, %v2022_v12, %v2017_v38  ;;  %v1753_v57 = vadd.f32 %v3911_v61, %v1501_v58  ;;  %v3211_v12 = vld [vmem:[%s3538_s18 + $0x10] sm:$0xff]  ;;  %v3120_v54 = vpop.eup %3119  ;;  %v1060_v15 = vmul.f32 %v3118_v31, %v3647_v37 }
  0xfa   : >> { %v2031_v6 = vsel %vm2030_vm1, %v2029_v30, %v2024_v62  ;;  %v2050_v8 = vrot.slane %v1754_v56, %v3941_v24  ;;  %1642 = vadd.xlane.f32.xlu1 %v1055_v36  ;;  %v2095_v36 = vadd.s32 4294967200, %v3886_v44  ;;  %v704_v52 = vadd.f32 %v3211_v12, %v3970_v47 }
  0xfb   : >> { %v2038_v21 = vsel %vm2037_vm2, %v2036_v48, %v2031_v6  ;;  %v2043_v22 = vrot.slane %v1753_v57, %v3935_v9  ;;  %1640 = vadd.xlane.f32.xlu0 %v1054_v42  ;;  %v1507_v25 = vpop.xlane.xlu1 %1506  ;;  %v2102_v48 = vadd.s32 4294967192, %v3886_v44  ;;  %v689_v62 = vadd.f32 %v3212_v59, %v3931_v3  ;;  %v3122_v57 = vpop.eup %3121 }
  0xfc   : >> { %v1756_v14 = vadd.f32 %v3911_v61, %v1507_v25  ;;  %v1505_v19 = vpop.xlane.xlu0 %1504  ;;  %3135 = vtanh.f32 %v704_v52 }
  0xfd   : >> { %v2045_v29 = vsel %vm2044_vm3, %v2043_v22, %v2038_v21  ;;  %v1755_v30 = vadd.f32 %v3911_v61, %v1505_v19  ;;  %v4032_v6 = vsub.s32 %v2102_v48, %v3562_v4  ;;  %v2109_v21 = vadd.s32 4294967184, %v3886_v44  ;;  %v3213_v22 = vld [vmem:[%s3538_s18 + $0x20] sm:$0xff] }
  0xfe   : >> { %v2064_v27 = vrot.slane %v1756_v14, %v3964_v46  ;;  %v2052_v38 = vsel %vm2051_vm4, %v2050_v8, %v2045_v29  ;;  %1646 = vadd.xlane.f32.xlu1 %v1057_v20  ;;  %v4035_v8 = vsub.s32 %v2095_v36, %v3562_v4  ;;  %v2116_v20 = vadd.s32 4294967176, %v3886_v44  ;;  %v4048_v14 = vld [vmem:[%s4623_s3] ss:$0 sm:$0xff]  ;;  %v3124_v29 = vpop.eup %3123 }
  0xff   : >> { %v2057_v11 = vrot.slane %v1755_v30, %v3959_v41  ;;  %1644 = vadd.xlane.f32.xlu0 %v1056_v13  ;;  %v1511_v51 = vpop.xlane.xlu1 %1510  ;;  %v690_v25 = vadd.f32 %v3213_v22, %v3931_v3  ;;  %v1076_v19 = vmul.f32 %v4048_v14, %v3120_v54  ;;  %v1062_v34 = vmul.f32 %v4048_v14, %v3122_v57 }
 0x100   : >> { %v1758_v43 = vadd.f32 %v3911_v61, %v1511_v51  ;;  %v1509_v32 = vpop.xlane.xlu0 %1508  ;;  %3137 = vtanh.f32 %v689_v62  ;;  %v4060_v51 = vsub.s32 %v2116_v20, %v3562_v4  ;;  %v4065_v31 = vsub.s32 %v2109_v21, %v3562_v4 }
 0x101   : >> { %v2059_v50 = vsel %vm2058_vm5, %v2057_v11, %v2052_v38  ;;  %v1757_v1 = vadd.f32 %v3911_v61, %v1509_v32  ;;  %3139 = vtanh.f32 %v690_v25 }
 0x102   : >> { %v2078_v18 = vrot.slane %v1758_v43, %v3982_v55  ;;  %v2066_v42 = vsel %vm2065_vm6, %v2064_v27, %v2059_v50  ;;  %1650 = vadd.xlane.f32.xlu1 %v1059_v39  ;;  %v4054_v27 = vld [vmem:[%s3538_s18 + $0x28] sm:$0xff]  ;;  %v3126_v39 = vpop.eup %3125  ;;  %v4068_v43 = vld [vmem:[%s3538_s18 + $0x30] sm:$0xff]  ;;  %v1063_v50 = vmul.f32 %v4048_v14, %v3124_v29 }
 0x103   : >> { %v2071_v56 = vrot.slane %v1757_v1, %v3967_v35  ;;  %1648 = vadd.xlane.f32.xlu0 %v1058_v40  ;;  %v1515_v58 = vpop.xlane.xlu1 %1514  ;;  %v675_v38 = vadd.f32 %v4054_v27, %v3902_v53  ;;  %v676_v32 = vadd.f32 %v4068_v43, %v3902_v53  ;;  %v3128_v1 = vpop.eup %3127  ;;  %v1077_v4 = vmul.f32 %v4048_v14, %v3126_v39 }
 0x104   : >> { %v1760_v49 = vadd.f32 %v3911_v61, %v1515_v58  ;;  %v1513_v5 = vpop.xlane.xlu0 %1512 }
 0x105   : >> { %v2073_v17 = vsel %vm2072_vm7, %v2071_v56, %v2066_v42  ;;  %v1759_v37 = vadd.f32 %v3911_v61, %v1513_v5  ;;  %3141 = vtanh.f32 %v675_v38  ;;  %v3130_v42 = vpop.eup %3129 }
 0x106   : >> { %v2092_v13 = vrot.slane %v1760_v49, %v4005_v33  ;;  %v2080_v7 = vsel %vm2079_vm8, %v2078_v18, %v2073_v17  ;;  %1654 = vadd.xlane.f32.xlu1 %v1061_v45  ;;  %v705_v18 = vadd.f32 %v3212_v59, %v3970_v47  ;;  %v1092_v49 = vmul.f32 %v4048_v14, %v3128_v1  ;;  %v3132_v59 = vpop.eup %3131 }
 0x107   : >> { %v2085_v30 = vrot.slane %v1759_v37, %v4000_v26  ;;  %1652 = vadd.xlane.f32.xlu0 %v1060_v15  ;;  %v1519_v44 = vpop.xlane.xlu1 %1518  ;;  %v706_v15 = vadd.f32 %v3213_v22, %v3970_v47  ;;  %3143 = vtanh.f32 %v676_v32  ;;  %v1078_v17 = vmul.f32 %v4048_v14, %v3130_v42  ;;  %v3134_v21 = vpop.eup %3133 }
 0x108   : >> { %v1762_v28 = vadd.f32 %v3911_v61, %v1519_v44  ;;  %v1517_v11 = vpop.xlane.xlu0 %1516  ;;  %3145 = vtanh.f32 %v705_v18  ;;  %v691_v37 = vadd.f32 %v4054_v27, %v3931_v3  ;;  %v1064_v44 = vmul.f32 %v4048_v14, %v3132_v59 }
 0x109   : >> { %v2087_v40 = vsel %vm2086_vm9, %v2085_v30, %v2080_v7  ;;  %v1761_v23 = vadd.f32 %v3911_v61, %v1517_v11  ;;  %3147 = vtanh.f32 %v706_v15  ;;  %v4102_v11 = vld [vmem:[%s3538_s18 + $0x38] sm:$0xff]  ;;  %v708_v59 = vadd.f32 %v4068_v43, %v3970_v47 }
 0x10a   : >> { %v2106_v48 = vrot.slane %v1762_v28, %v4032_v6  ;;  %v2094_v36 = vsel %vm2093_vm10, %v2092_v13, %v2087_v40  ;;  %1684 = vadd.xlane.f32.xlu1 %v1076_v19  ;;  %v692_v19 = vadd.f32 %v4068_v43, %v3931_v3  ;;  %v1093_v28 = vmul.f32 %v4048_v14, %v3134_v21 }
 0x10b   : >> { %v2099_v12 = vrot.slane %v1761_v23, %v4035_v8  ;;  %1656 = vadd.xlane.f32.xlu0 %v1062_v34  ;;  %v1523_v52 = vpop.xlane.xlu1 %1522  ;;  %v3136_v34 = vpop.eup %3135  ;;  %3149 = vtanh.f32 %v691_v37  ;;  %v677_v40 = vadd.f32 %v4102_v11, %v3902_v53 }
 0x10c   : >> { %v1764_v45 = vadd.f32 %v3911_v61, %v1523_v52  ;;  %v1521_v54 = vpop.xlane.xlu0 %1520  ;;  %3151 = vtanh.f32 %v692_v19  ;;  %v4112_v52 = vld [vmem:[%s3538_s18 + $0x40] sm:$0xff] }
 0x10d   : >> { %v2101_v56 = vsel %vm2100_vm11, %v2099_v12, %v2094_v36  ;;  %v1763_v58 = vadd.f32 %v3911_v61, %v1521_v54  ;;  %v3138_v23 = vpop.eup %3137  ;;  %v1094_v12 = vmul.f32 %v4048_v14, %v3136_v34  ;;  %3153 = vtanh.f32 %v677_v40 }
 0x10e   : >> { %v2120_v62 = vrot.slane %v1764_v45, %v4060_v51  ;;  %v2108_v57 = vsel %vm2107_vm12, %v2106_v48, %v2101_v56  ;;  %1658 = vadd.xlane.f32.xlu1 %v1063_v50  ;;  %v3140_v18 = vpop.eup %3139  ;;  %v1079_v54 = vmul.f32 %v4048_v14, %v3138_v23  ;;  %v707_v56 = vadd.f32 %v4054_v27, %v3970_v47 }
 0x10f   : >> { %v2113_v5 = vrot.slane %v1763_v58, %v4065_v31  ;;  %1686 = vadd.xlane.f32.xlu0 %v1077_v4  ;;  %v1527_v20 = vpop.xlane.xlu1 %1526  ;;  %v678_v4 = vadd.f32 %v4112_v52, %v3902_v53 }
 0x110   : >> { %v1766_v22 = vadd.f32 %v3911_v61, %v1527_v20  ;;  %v1525_v25 = vpop.xlane.xlu0 %1524 }
 0x111   : >> { %v2115_v13 = vsel %vm2114_vm13, %v2113_v5, %v2108_v57  ;;  %v1765_v7 = vadd.f32 %v3911_v61, %v1525_v25  ;;  %3155 = vtanh.f32 %v678_v4  ;;  %v693_v25 = vadd.f32 %v4102_v11, %v3931_v3 }
 0x112   : >> { %v4095_v29 = vsel %vm2121_vm14, %v2120_v62, %v2115_v13  ;;  %v2130_v30 = vrot.slane %v1766_v22, %v3925_v2  ;;  %1716 = vadd.xlane.f32.xlu1 %v1092_v49  ;;  %v3142_v58 = vpop.eup %3141  ;;  %3157 = vtanh.f32 %v707_v56 }
 0x113   : >> { %v2126_v38 = vrot.slane %v1765_v7, %v3919_v16  ;;  %1688 = vadd.xlane.f32.xlu0 %v1078_v17  ;;  %v1531_v39 = vpop.xlane.xlu1 %1530  ;;  %v1080_v17 = vmul.f32 %v4048_v14, %v3140_v18  ;;  %v1065_v22 = vmul.f32 %v4048_v14, %v3142_v58  ;;  %3159 = vtanh.f32 %v708_v59 }
 0x114   : >> { %v1768_v32 = vadd.f32 %v3911_v61, %v1531_v39  ;;  %v1529_v48 = vpop.xlane.xlu0 %1528  ;;  %v3144_v27 = vpop.eup %3143  ;;  %3161 = vtanh.f32 %v693_v25  ;;  %v709_v59 = vadd.f32 %v4102_v11, %v3970_v47 }
 0x115   : >> { %v2131_v36 = vsel %vm2023_vm0, %v2130_v30, %v2126_v38  ;;  %v1767_v50 = vadd.f32 %v3911_v61, %v1529_v48  ;;  %v3146_v43 = vpop.eup %3145  ;;  %v1066_v39 = vmul.f32 %v4048_v14, %v3144_v27  ;;  %v4143_v48 = vld [vmem:[%s3538_s18 + $0x48] sm:$0xff] }
 0x116   : >> { %v2140_v1 = vrot.slane %v1768_v32, %v3922_v63  ;;  %1660 = vadd.xlane.f32.xlu1 %v1064_v44  ;;  %v694_v44 = vadd.f32 %v4112_v52, %v3931_v3  ;;  %v1095_v32 = vmul.f32 %v4048_v14, %v3146_v43 }
 0x117   : >> { %v2135_v42 = vrot.slane %v1767_v50, %v3915_v60  ;;  %1718 = vadd.xlane.f32.xlu0 %v1093_v28  ;;  %v1535_v45 = vpop.xlane.xlu1 %1534  ;;  %v3148_v28 = vpop.eup %3147 }
 0x118   : >> { %v1770_v15 = vadd.f32 %v3911_v61, %v1535_v45  ;;  %v1533_v62 = vpop.xlane.xlu0 %1532  ;;  %v3150_v50 = vpop.eup %3149  ;;  %v1096_v58 = vmul.f32 %v4048_v14, %v3148_v28  ;;  %3163 = vtanh.f32 %v694_v44 }
 0x119   : >> { %v2136_v57 = vsel %vm2030_vm1, %v2135_v42, %v2131_v36  ;;  %v1769_v49 = vadd.f32 %v3911_v61, %v1533_v62  ;;  %v679_v36 = vadd.f32 %v4143_v48, %v3902_v53  ;;  %v4151_v42 = vld [vmem:[%s3538_s18 + $0x50] sm:$0xff] }
 0x11a   : >> { %v2150_v5 = vrot.slane %v1770_v15, %v3941_v24  ;;  %v2141_v20 = vsel %vm2037_vm2, %v2140_v1, %v2136_v57  ;;  %1720 = vadd.xlane.f32.xlu1 %v1094_v12  ;;  %v680_v45 = vadd.f32 %v4151_v42, %v3902_v53  ;;  %v3152_v15 = vpop.eup %3151  ;;  %v696_v28 = vadd.f32 %v4151_v42, %v3931_v3 }
 0x11b   : >> { %v2145_v37 = vrot.slane %v1769_v49, %v3935_v9  ;;  %1690 = vadd.xlane.f32.xlu0 %v1079_v54  ;;  %v1539_v21 = vpop.xlane.xlu1 %1538  ;;  %v1081_v49 = vmul.f32 %v4048_v14, %v3150_v50  ;;  %3165 = vtanh.f32 %v679_v36  ;;  %v1082_v43 = vmul.f32 %v4048_v14, %v3152_v15 }
 0x11c   : >> { %v1772_v13 = vadd.f32 %v3911_v61, %v1539_v21  ;;  %v1537_v7 = vpop.xlane.xlu0 %1536  ;;  %v710_v21 = vadd.f32 %v4112_v52, %v3970_v47  ;;  %3167 = vtanh.f32 %v680_v45 }
 0x11d   : >> { %v2146_v19 = vsel %vm2044_vm3, %v2145_v37, %v2141_v20  ;;  %v1771_v30 = vadd.f32 %v3911_v61, %v1537_v7  ;;  %3169 = vtanh.f32 %v709_v59 }
 0x11e   : >> { %v2160_v34 = vrot.slane %v1772_v13, %v3964_v46  ;;  %v2151_v38 = vsel %vm2051_vm4, %v2150_v5, %v2146_v19  ;;  %1692 = vadd.xlane.f32.xlu1 %v1080_v17  ;;  %v3154_v5 = vpop.eup %3153  ;;  %3171 = vtanh.f32 %v710_v21  ;;  %v711_v21 = vadd.f32 %v4143_v48, %v3970_v47 }
 0x11f   : >> { %v2155_v40 = vrot.slane %v1771_v30, %v3959_v41  ;;  %1662 = vadd.xlane.f32.xlu0 %v1065_v22  ;;  %v1543_v23 = vpop.xlane.xlu1 %1542  ;;  %v3156_v11 = vpop.eup %3155  ;;  %v1067_v19 = vmul.f32 %v4048_v14, %v3154_v5  ;;  %v695_v30 = vadd.f32 %v4143_v48, %v3931_v3 }
 0x120   : >> { %v1774_v1 = vadd.f32 %v3911_v61, %v1543_v23  ;;  %v1541_v12 = vpop.xlane.xlu0 %1540  ;;  %v3158_v52 = vpop.eup %3157 }
 0x121   : >> { %v2156_v4 = vsel %vm2058_vm5, %v2155_v40, %v2151_v38  ;;  %v1773_v18 = vadd.f32 %v3911_v61, %v1541_v12  ;;  %v3160_v36 = vpop.eup %3159  ;;  %v1097_v12 = vmul.f32 %v4048_v14, %v3158_v52  ;;  %3173 = vtanh.f32 %v695_v30 }
 0x122   : >> { %v2170_v54 = vrot.slane %v1774_v1, %v3982_v55  ;;  %v2161_v56 = vsel %vm2065_vm6, %v2160_v34, %v2156_v4  ;;  %1664 = vadd.xlane.f32.xlu1 %v1066_v39  ;;  %v4185_v4 = vld [vmem:[%s3538_s18 + $0x58] sm:$0xff]  ;;  %v3162_v45 = vpop.eup %3161  ;;  %v1098_v5 = vmul.f32 %v4048_v14, %v3160_v36  ;;  %3175 = vtanh.f32 %v696_v28 }
 0x123   : >> { %v2165_v62 = vrot.slane %v1773_v18, %v3967_v35  ;;  %1722 = vadd.xlane.f32.xlu0 %v1095_v32  ;;  %v1547_v57 = vpop.xlane.xlu1 %1546  ;;  %v1068_v32 = vmul.f32 %v4048_v14, %v3156_v11  ;;  %v681_v18 = vadd.f32 %v4185_v4, %v3902_v53 }
 0x124   : >> { %v1776_v20 = vadd.f32 %v3911_v61, %v1547_v57  ;;  %v1545_v17 = vpop.xlane.xlu0 %1544 }
 0x125   : >> { %v2166_v27 = vsel %vm2072_vm7, %v2165_v62, %v2161_v56  ;;  %v1775_v37 = vadd.f32 %v3911_v61, %v1545_v17  ;;  %v4193_v62 = vld [vmem:[%s3538_s18 + $0x60] sm:$0xff]  ;;  %3177 = vtanh.f32 %v681_v18 }
 0x126   : >> { %v2180_v22 = vrot.slane %v1776_v20, %v4005_v33  ;;  %v2171_v25 = vsel %vm2079_vm8, %v2170_v54, %v2166_v27  ;;  %1724 = vadd.xlane.f32.xlu1 %v1096_v58  ;;  %v682_v57 = vadd.f32 %v4193_v62, %v3902_v53  ;;  %v3164_v20 = vpop.eup %3163 }
 0x127   : >> { %v2175_v13 = vrot.slane %v1775_v37, %v4000_v26  ;;  %1694 = vadd.xlane.f32.xlu0 %v1081_v49  ;;  %v1551_v7 = vpop.xlane.xlu1 %1550  ;;  %v1083_v37 = vmul.f32 %v4048_v14, %v3162_v45  ;;  %v1084_v48 = vmul.f32 %v4048_v14, %v3164_v20  ;;  %v4237_v20 = vld [vmem:[%s3538_s18 + $0x70] sm:$0xff] }
 0x128   : >> { %v1778_v44 = vadd.f32 %v3911_v61, %v1551_v7  ;;  %v1549_v34 = vpop.xlane.xlu0 %1548  ;;  %v697_v7 = vadd.f32 %v4185_v4, %v3931_v3  ;;  %3179 = vtanh.f32 %v682_v57 }
 0x129   : >> { %v2176_v38 = vsel %vm2086_vm9, %v2175_v13, %v2171_v25  ;;  %v1777_v39 = vadd.f32 %v3911_v61, %v1549_v34  ;;  %3181 = vtanh.f32 %v711_v21 }
 0x12a   : >> { %v2190_v40 = vrot.slane %v1778_v44, %v4032_v6  ;;  %v2181_v23 = vsel %vm2093_vm10, %v2180_v22, %v2176_v38  ;;  %1696 = vadd.xlane.f32.xlu1 %v1082_v43  ;;  %v3166_v22 = vpop.eup %3165 }
 0x12b   : >> { %v2185_v50 = vrot.slane %v1777_v39, %v4035_v8  ;;  %1666 = vadd.xlane.f32.xlu0 %v1067_v19  ;;  %v1555_v1 = vpop.xlane.xlu1 %1554  ;;  %v712_v19 = vadd.f32 %v4151_v42, %v3970_v47  ;;  %v3168_v44 = vpop.eup %3167  ;;  %v1069_v28 = vmul.f32 %v4048_v14, %v3166_v22 }
 0x12c   : >> { %v1780_v54 = vadd.f32 %v3911_v61, %v1555_v1  ;;  %v1553_v56 = vpop.xlane.xlu0 %1552  ;;  %v3170_v42 = vpop.eup %3169  ;;  %v698_v1 = vadd.f32 %v4193_v62, %v3931_v3 }
 0x12d   : >> { %v2186_v58 = vsel %vm2100_vm11, %v2185_v50, %v2181_v23  ;;  %v1779_v15 = vadd.f32 %v3911_v61, %v1553_v56  ;;  %3183 = vtanh.f32 %v712_v19  ;;  %v4229_v56 = vld [vmem:[%s3538_s18 + $0x68] sm:$0xff] }
 0x12e   : >> { %v2200_v49 = vrot.slane %v1780_v54, %v4060_v51  ;;  %v2191_v59 = vsel %vm2107_vm12, %v2190_v40, %v2186_v58  ;;  %1668 = vadd.xlane.f32.xlu1 %v1068_v32  ;;  %v1099_v54 = vmul.f32 %v4048_v14, %v3170_v42  ;;  %3185 = vtanh.f32 %v697_v7 }
 0x12f   : >> { %v2195_v17 = vrot.slane %v1779_v15, %v4065_v31  ;;  %1726 = vadd.xlane.f32.xlu0 %v1097_v12  ;;  %v1559_v27 = vpop.xlane.xlu1 %1558  ;;  %v3172_v12 = vpop.eup %3171  ;;  %v683_v58 = vadd.f32 %v4229_v56, %v3902_v53  ;;  %3187 = vtanh.f32 %v698_v1 }
 0x130   : >> { %v1782_v25 = vadd.f32 %v3911_v61, %v1559_v27  ;;  %v1557_v43 = vpop.xlane.xlu0 %1556  ;;  %v3174_v15 = vpop.eup %3173  ;;  %v1100_v21 = vmul.f32 %v4048_v14, %v3172_v12  ;;  %v700_v12 = vadd.f32 %v4237_v20, %v3931_v3 }
 0x131   : >> { %v2196_v11 = vsel %vm2114_vm13, %v2195_v17, %v2191_v59  ;;  %v1781_v13 = vadd.f32 %v3911_v61, %v1557_v43  ;;  %v684_v17 = vadd.f32 %v4237_v20, %v3902_v53  ;;  %v3176_v22 = vpop.eup %3175  ;;  %3189 = vtanh.f32 %v683_v58 }
 0x132   : >> { %v2201_v30 = vsel %vm2121_vm14, %v2200_v49, %v2196_v11  ;;  %v2209_v52 = vrot.slane %v1782_v25, %v3925_v2  ;;  %1728 = vadd.xlane.f32.xlu1 %v1098_v5  ;;  %v1085_v11 = vmul.f32 %v4048_v14, %v3174_v15  ;;  %v3178_v7 = vpop.eup %3177 }
 0x133   : >> { %v4215_v34 = vsel %vm2676_vm15, %v2201_v30, %v4095_v29  ;;  %v2205_v38 = vrot.slane %v1781_v13, %v3919_v16  ;;  %1698 = vadd.xlane.f32.xlu0 %v1083_v37  ;;  %v1563_v39 = vpop.xlane.xlu1 %1562  ;;  %v1070_v29 = vmul.f32 %v4048_v14, %v3168_v44  ;;  %v713_v13 = vadd.f32 %v4185_v4, %v3970_v47 }
 0x134   : >> { %v1784_v40 = vadd.f32 %v3911_v61, %v1563_v39  ;;  %v1561_v23 = vpop.xlane.xlu0 %1560  ;;  %v714_v44 = vadd.f32 %v4193_v62, %v3970_v47  ;;  %3191 = vtanh.f32 %v684_v17  ;;  %vm2678_vm15 = vcmask 1042434  }
 0x135   : >> { %v2210_v32 = vsel %vm2023_vm0, %v2209_v52, %v2205_v38  ;;  %v1783_v36 = vadd.f32 %v3911_v61, %v1561_v23  ;;  %v3180_v4 = vpop.eup %3179  ;;  %v1071_v23 = vmul.f32 %v4048_v14, %v3178_v7  ;;  %3193 = vtanh.f32 %v713_v13 }
 0x136   : >> { %v2219_v50 = vrot.slane %v1784_v40, %v3922_v63  ;;  %1700 = vadd.xlane.f32.xlu1 %v1084_v48  ;;  %v3182_v62 = vpop.eup %3181  ;;  %3195 = vtanh.f32 %v714_v44 }
 0x137   : >> { %v2214_v18 = vrot.slane %v1783_v36, %v3915_v60  ;;  %1670 = vadd.xlane.f32.xlu0 %v1069_v28  ;;  %v1567_v45 = vpop.xlane.xlu1 %1566  ;;  %v1086_v28 = vmul.f32 %v4048_v14, %v3176_v22 }
 0x138   : >> { %v1786_v57 = vadd.f32 %v3911_v61, %v1567_v45  ;;  %v1565_v49 = vpop.xlane.xlu0 %1564 }
 0x139   : >> { %v2215_v59 = vsel %vm2030_vm1, %v2214_v18, %v2210_v32  ;;  %v1785_v5 = vadd.f32 %v3911_v61, %v1565_v49  ;;  %v699_v32 = vadd.f32 %v4229_v56, %v3931_v3  ;;  %v1101_v49 = vmul.f32 %v4048_v14, %v3182_v62 }
 0x13a   : >> { %v2229_v27 = vrot.slane %v1786_v57, %v3941_v24  ;;  %v2220_v37 = vsel %vm2037_vm2, %v2219_v50, %v2215_v59  ;;  %1672 = vadd.xlane.f32.xlu1 %v1070_v29  ;;  %v3184_v58 = vpop.eup %3183  ;;  %v3225_v59 = vld [vmem:[%s3538_s18 + $0x78] sm:$0xff]  ;;  %s3286_s18 = sshll.u32 (%p347_p8), %s3382_s16, 4  ;;  %s3287_s18 = int_to_ptr.vmem [resolvable:$false] %s3286_s18 }
 0x13b   : >> { %v2224_v25 = vrot.slane %v1785_v5, %v3935_v9  ;;  %1730 = vadd.xlane.f32.xlu0 %v1099_v54  ;;  %v1571_v43 = vpop.xlane.xlu1 %1570  ;;  %v1072_v54 = vmul.f32 %v4048_v14, %v3180_v4  ;;  %3197 = vtanh.f32 %v699_v32  ;;  %v685_v5 = vadd.f32 %v3225_v59, %v3902_v53  ;;  %v3186_v17 = vpop.eup %3185  ;;  %s3288_s23 = scalar_lea.vmem (%p347_p8), %s3287_s18, 512  ;;  %p3289_p4 = scmp.lt.s32.totalorder (%p347_p8), %s4572_s26, %s3287_s18 }
 0x13c   : >> { %v1788_v19 = vadd.f32 %v3911_v61, %v1571_v43  ;;  %v1569_v30 = vpop.xlane.xlu0 %1568  ;;  %v1102_v13 = vmul.f32 %v4048_v14, %v3184_v58  ;;  %3199 = vtanh.f32 %v700_v12  ;;  %v3188_v7 = vpop.eup %3187  ;;  %p3290_p7 = scmp.lt.s32.totalorder (%p347_p8), %s3288_s23, %s3282_s15 }
 0x13d   : >> { %v2225_v52 = vsel %vm2044_vm3, %v2224_v25, %v2220_v37  ;;  %v1787_v48 = vadd.f32 %v3911_v61, %v1569_v30  ;;  %v701_v25 = vadd.f32 %v3225_v59, %v3931_v3  ;;  %v1087_v30 = vmul.f32 %v4048_v14, %v3186_v17 }
 0x13e   : >> { %v2239_v38 = vrot.slane %v1788_v19, %v3964_v46  ;;  %v2230_v39 = vsel %vm2051_vm4, %v2229_v27, %v2225_v52  ;;  %1732 = vadd.xlane.f32.xlu1 %v1100_v21  ;;  %3201 = vtanh.f32 %v685_v5  ;;  %v715_v52 = vadd.f32 %v4229_v56, %v3970_v47  ;;  %v3190_v3 = vpop.eup %3189  ;;  %p3291_p1 = por (%p347_p8), %p3290_p7, %p3289_p4 }
 0x13f   : >> { %v2234_v42 = vrot.slane %v1787_v48, %v3959_v41  ;;  %1702 = vadd.xlane.f32.xlu0 %v1085_v11  ;;  %v1575_v40 = vpop.xlane.xlu1 %1574  ;;  %3203 = vtanh.f32 %v701_v25  ;;  %v1073_v62 = vmul.f32 %v4048_v14, %v3190_v3 }
 0x140   : >> { %v1790_v36 = vadd.f32 %v3911_v61, %v1575_v40  ;;  %v1573_v50 = vpop.xlane.xlu0 %1572  ;;  %v1088_v40 = vmul.f32 %v4048_v14, %v3188_v7  ;;  %3205 = vtanh.f32 %v715_v52  ;;  %p3292_p10 = pnand (%p347_p8), %p3291_p1, %p3285_p6 }
 0x141   : >> { %v2235_v29 = vsel %vm2058_vm5, %v2234_v42, %v2230_v39  ;;  %v1789_v1 = vadd.f32 %v3911_v61, %v1573_v50 }
 0x142   : >> { %v2249_v18 = vrot.slane %v1790_v36, %v3982_v55  ;;  %v2240_v45 = vsel %vm2065_vm6, %v2239_v38, %v2235_v29  ;;  %1704 = vadd.xlane.f32.xlu1 %v1086_v28  ;;  %v717_v28 = vadd.f32 %v3225_v59, %v3970_v47  ;;  %v716_v36 = vadd.f32 %v4237_v20, %v3970_v47 }
 0x143   : >> { %v2244_v15 = vrot.slane %v1789_v1, %v3967_v35  ;;  %1674 = vadd.xlane.f32.xlu0 %v1071_v23  ;;  %v1579_v57 = vpop.xlane.xlu1 %1578  ;;  %v3192_v23 = vpop.eup %3191 }
 0x144   : >> { %v1792_v27 = vadd.f32 %v3911_v61, %v1579_v57  ;;  %v1577_v37 = vpop.xlane.xlu0 %1576  ;;  %v3194_v50 = vpop.eup %3193  ;;  %v1074_v58 = vmul.f32 %v4048_v14, %v3192_v23  ;;  %3207 = vtanh.f32 %v717_v28 }
 0x145   : >> { %v2245_v21 = vsel %vm2072_vm7, %v2244_v15, %v2240_v45  ;;  %v1791_v22 = vadd.f32 %v3911_v61, %v1577_v37  ;;  %v3196_v15 = vpop.eup %3195  ;;  %v1103_v20 = vmul.f32 %v4048_v14, %v3194_v50  ;;  %3209 = vtanh.f32 %v716_v36 }
 0x146   : >> { %v2259_v43 = vrot.slane %v1792_v27, %v4005_v33  ;;  %v2250_v11 = vsel %vm2079_vm8, %v2249_v18, %v2245_v21  ;;  %1676 = vadd.xlane.f32.xlu1 %v1072_v54 }
 0x147   : >> { %v2254_v53 = vrot.slane %v1791_v22, %v4000_v26  ;;  %1734 = vadd.xlane.f32.xlu0 %v1101_v49  ;;  %v1583_v19 = vpop.xlane.xlu1 %1582  ;;  %v1104_v22 = vmul.f32 %v4048_v14, %v3196_v15 }
 0x148   : >> { %v1794_v48 = vadd.f32 %v3911_v61, %v1583_v19  ;;  %v1581_v44 = vpop.xlane.xlu0 %1580  ;;  %v3198_v49 = vpop.eup %3197 }
 0x149   : >> { %v2255_v38 = vsel %vm2086_vm9, %v2254_v53, %v2250_v11  ;;  %v1793_v39 = vadd.f32 %v3911_v61, %v1581_v44  ;;  %v3200_v25 = vpop.eup %3199  ;;  %v1089_v7 = vmul.f32 %v4048_v14, %v3198_v49 }
 0x14a   : >> { %v2269_v4 = vrot.slane %v1794_v48, %v4032_v6  ;;  %v2260_v42 = vsel %vm2093_vm10, %v2259_v43, %v2255_v38  ;;  %1736 = vadd.xlane.f32.xlu1 %v1102_v13 }
 0x14b   : >> { %v2264_v56 = vrot.slane %v1793_v39, %v4035_v8  ;;  %1706 = vadd.xlane.f32.xlu0 %v1087_v30  ;;  %v1587_v32 = vpop.xlane.xlu1 %1586  ;;  %v3202_v53 = vpop.eup %3201 }
 0x14c   : >> { %v1796_v29 = vadd.f32 %v3911_v61, %v1587_v32  ;;  %v1585_v1 = vpop.xlane.xlu0 %1584  ;;  %v3204_v44 = vpop.eup %3203  ;;  %v1075_v28 = vmul.f32 %v4048_v14, %v3202_v53 }
 0x14d   : >> { %v2265_v12 = vsel %vm2100_vm11, %v2264_v56, %v2260_v42  ;;  %v1795_v18 = vadd.f32 %v3911_v61, %v1585_v1  ;;  %v1091_v36 = vmul.f32 %v4048_v14, %v3204_v44 }
 0x14e   : >> { %v2279_v45 = vrot.slane %v1796_v29, %v4060_v51  ;;  %v2270_v54 = vsel %vm2107_vm12, %v2269_v4, %v2265_v12  ;;  %1708 = vadd.xlane.f32.xlu1 %v1088_v40  ;;  %v3206_v4 = vpop.eup %3205 }
 0x14f   : >> { %v2274_v57 = vrot.slane %v1795_v18, %v4065_v31  ;;  %1678 = vadd.xlane.f32.xlu0 %v1073_v62  ;;  %v1591_v47 = vpop.xlane.xlu1 %1590  ;;  %v1105_v12 = vmul.f32 %v4048_v14, %v3206_v4 }
 0x150   : >> { %v1798_v59 = vadd.f32 %v3911_v61, %v1591_v47  ;;  %v1589_v5 = vpop.xlane.xlu0 %1588 }
 0x151   : >> { %v2275_v17 = vsel %vm2114_vm13, %v2274_v57, %v2270_v54  ;;  %v1797_v27 = vadd.f32 %v3911_v61, %v1589_v5  ;;  %v3208_v50 = vpop.eup %3207 }
 0x152   : >> { %v2280_v37 = vsel %vm2121_vm14, %v2279_v45, %v2275_v17  ;;  %v2288_v21 = vrot.slane %v1798_v59, %v3925_v2  ;;  %1680 = vadd.xlane.f32.xlu1 %v1074_v58  ;;  %v3210_v18 = vpop.eup %3209 }
 0x153   : >> { %v4309_v43 = vsel %vm2678_vm15, %v2280_v37, %v4215_v34  ;;  %v2284_v11 = vrot.slane %v1797_v27, %v3919_v16  ;;  %1738 = vadd.xlane.f32.xlu0 %v1103_v20  ;;  %v1595_v13 = vpop.xlane.xlu1 %1594  ;;  %v1090_v34 = vmul.f32 %v4048_v14, %v3200_v25  ;;  %v1107_v20 = vmul.f32 %v4048_v14, %v3208_v50 }
 0x154   : >> { %v1800_v19 = vadd.f32 %v3911_v61, %v1595_v13  ;;  %v1593_v30 = vpop.xlane.xlu0 %1592  ;;  %v1106_v5 = vmul.f32 %v4048_v14, %v3210_v18  ;;  %vm2680_vm15 = vcmask 1043459  }
 0x155   : >> { %v2289_v52 = vsel %vm2023_vm0, %v2288_v21, %v2284_v11  ;;  %v1799_v3 = vadd.f32 %v3911_v61, %v1593_v30 }
 0x156   : >> { %v2298_v48 = vrot.slane %v1800_v19, %v3922_v63  ;;  %1740 = vadd.xlane.f32.xlu1 %v1104_v22 }
 0x157   : >> { %v2293_v38 = vrot.slane %v1799_v3, %v3915_v60  ;;  %1710 = vadd.xlane.f32.xlu0 %v1089_v7  ;;  %v1599_v39 = vpop.xlane.xlu1 %1598 }
 0x158   : >> { %v1802_v42 = vadd.f32 %v3911_v61, %v1599_v39  ;;  %v1597_v40 = vpop.xlane.xlu0 %1596 }
 0x159   : >> { %v2294_v23 = vsel %vm2030_vm1, %v2293_v38, %v2289_v52  ;;  %v1801_v56 = vadd.f32 %v3911_v61, %v1597_v40 }
 0x15a   : >> { %v2308_v32 = vrot.slane %v1802_v42, %v3941_v24  ;;  %v2299_v62 = vsel %vm2037_vm2, %v2298_v48, %v2294_v23  ;;  %1712 = vadd.xlane.f32.xlu1 %v1090_v34 }
 0x15b   : >> { %v2303_v29 = vrot.slane %v1801_v56, %v3935_v9  ;;  %1682 = vadd.xlane.f32.xlu0 %v1075_v28  ;;  %v1603_v1 = vpop.xlane.xlu1 %1602 }
 0x15c   : >> { %v1804_v45 = vadd.f32 %v3911_v61, %v1603_v1  ;;  %v1601_v54 = vpop.xlane.xlu0 %1600 }
 0x15d   : >> { %v2304_v58 = vsel %vm2044_vm3, %v2303_v29, %v2299_v62  ;;  %v1803_v15 = vadd.f32 %v3911_v61, %v1601_v54 }
 0x15e   : >> { %v2318_v57 = vrot.slane %v1804_v45, %v3964_v46  ;;  %v2309_v47 = vsel %vm2051_vm4, %v2308_v32, %v2304_v58  ;;  %1714 = vadd.xlane.f32.xlu1 %v1091_v36 }
 0x15f   : >> { %v2313_v49 = vrot.slane %v1803_v15, %v3959_v41  ;;  %1742 = vadd.xlane.f32.xlu0 %v1105_v12  ;;  %v1607_v59 = vpop.xlane.xlu1 %1606 }
 0x160   : >> { %v1806_v17 = vadd.f32 %v3911_v61, %v1607_v59  ;;  %v1605_v27 = vpop.xlane.xlu0 %1604 }
 0x161   : >> { %v2314_v37 = vsel %vm2058_vm5, %v2313_v49, %v2309_v47  ;;  %v1805_v21 = vadd.f32 %v3911_v61, %v1605_v27 }
 0x162   : >> { %v2328_v22 = vrot.slane %v1806_v17, %v3982_v55  ;;  %v2319_v25 = vsel %vm2065_vm6, %v2318_v57, %v2314_v37  ;;  %1746 = vadd.xlane.f32.xlu1 %v1107_v20 }
 0x163   : >> { %v2323_v11 = vrot.slane %v1805_v21, %v3967_v35  ;;  %1744 = vadd.xlane.f32.xlu0 %v1106_v5  ;;  %v1611_v13 = vpop.xlane.xlu1 %1610 }
 0x164   : >> { %v1808_v7 = vadd.f32 %v3911_v61, %v1611_v13  ;;  %v1609_v53 = vpop.xlane.xlu0 %1608 }
 0x165   : >> { %v2324_v14 = vsel %vm2072_vm7, %v2323_v11, %v2319_v25  ;;  %v1807_v19 = vadd.f32 %v3911_v61, %v1609_v53 }
 0x166   : >> { %v2338_v30 = vrot.slane %v1808_v7, %v4005_v33  ;;  %v2329_v52 = vsel %vm2079_vm8, %v2328_v22, %v2324_v14 }
 0x167   : >> { %v2333_v3 = vrot.slane %v1807_v19, %v4000_v26  ;;  %v1615_v48 = vpop.xlane.xlu1 %1614 }
 0x168   : >> { %v1810_v34 = vadd.f32 %v3911_v61, %v1615_v48  ;;  %v1613_v44 = vpop.xlane.xlu0 %1612 }
 0x169   : >> { %v2334_v38 = vsel %vm2086_vm9, %v2333_v3, %v2329_v52  ;;  %v1809_v39 = vadd.f32 %v3911_v61, %v1613_v44 }
 0x16a   : >> { %v2348_v28 = vrot.slane %v1810_v34, %v4032_v6  ;;  %v2339_v4 = vsel %vm2093_vm10, %v2338_v30, %v2334_v38 }
 0x16b   : >> { %v2343_v42 = vrot.slane %v1809_v39, %v4035_v8  ;;  %v1619_v40 = vpop.xlane.xlu1 %1618 }
 0x16c   : >> { %v1812_v23 = vadd.f32 %v3911_v61, %v1619_v40  ;;  %v1617_v56 = vpop.xlane.xlu0 %1616 }
 0x16d   : >> { %v2344_v32 = vsel %vm2100_vm11, %v2343_v42, %v2339_v4  ;;  %v1811_v62 = vadd.f32 %v3911_v61, %v1617_v56 }
 0x16e   : >> { %v2358_v36 = vrot.slane %v1812_v23, %v4060_v51  ;;  %v2349_v50 = vsel %vm2107_vm12, %v2348_v28, %v2344_v32 }
 0x16f   : >> { %v2353_v29 = vrot.slane %v1811_v62, %v4065_v31  ;;  %v1623_v1 = vpop.xlane.xlu1 %1622 }
 0x170   : >> { %v1814_v12 = vadd.f32 %v3911_v61, %v1623_v1  ;;  %v1621_v18 = vpop.xlane.xlu0 %1620 }
 0x171   : >> { %v2354_v45 = vsel %vm2114_vm13, %v2353_v29, %v2349_v50  ;;  %v1813_v54 = vadd.f32 %v3911_v61, %v1621_v18 }
 0x172   : >> { %v2359_v58 = vsel %vm2121_vm14, %v2358_v36, %v2354_v45  ;;  %v2367_v15 = vrot.slane %v1814_v12, %v3925_v2 }
 0x173   : >> { %v4366_v57 = vsel %vm2680_vm15, %v2359_v58, %v4309_v43  ;;  %v2363_v47 = vrot.slane %v1813_v54, %v3919_v16  ;;  %v1627_v20 = vpop.xlane.xlu1 %1626  ;;  %vm2682_vm15 = vcmask 1044484  }
 0x174   : >> { %v1816_v49 = vadd.f32 %v3911_v61, %v1627_v20  ;;  %v1625_v59 = vpop.xlane.xlu0 %1624 }
 0x175   : >> { %v2368_v5 = vsel %vm2023_vm0, %v2367_v15, %v2363_v47  ;;  %v1815_v17 = vadd.f32 %v3911_v61, %v1625_v59 }
 0x176   : >> { %v2377_v27 = vrot.slane %v1816_v49, %v3922_v63 }
 0x177   : >> { %v2372_v37 = vrot.slane %v1815_v17, %v3915_v60  ;;  %v1631_v21 = vpop.xlane.xlu1 %1630 }
 0x178   : >> { %v1818_v22 = vadd.f32 %v3911_v61, %v1631_v21  ;;  %v1629_v25 = vpop.xlane.xlu0 %1628 }
 0x179   : >> { %v2373_v43 = vsel %vm2030_vm1, %v2372_v37, %v2368_v5  ;;  %v1817_v11 = vadd.f32 %v3911_v61, %v1629_v25 }
 0x17a   : >> { %v2387_v13 = vrot.slane %v1818_v22, %v3941_v24  ;;  %v2378_v7 = vsel %vm2037_vm2, %v2377_v27, %v2373_v43 }
 0x17b   : >> { %v2382_v53 = vrot.slane %v1817_v11, %v3935_v9  ;;  %v1635_v14 = vpop.xlane.xlu1 %1634 }
 0x17c   : >> { %v1820_v19 = vadd.f32 %v3911_v61, %v1635_v14  ;;  %v1633_v30 = vpop.xlane.xlu0 %1632 }
 0x17d   : >> { %v2383_v52 = vsel %vm2044_vm3, %v2382_v53, %v2378_v7  ;;  %v1819_v3 = vadd.f32 %v3911_v61, %v1633_v30 }
 0x17e   : >> { %v2397_v48 = vrot.slane %v1820_v19, %v3964_v46  ;;  %v2388_v34 = vsel %vm2051_vm4, %v2387_v13, %v2383_v52 }
 0x17f   : >> { %v2392_v44 = vrot.slane %v1819_v3, %v3959_v41  ;;  %v1639_v38 = vpop.xlane.xlu1 %1638 }
 0x180   : >> { %v1822_v39 = vadd.f32 %v3911_v61, %v1639_v38  ;;  %v1637_v28 = vpop.xlane.xlu0 %1636 }
 0x181   : >> { %v2393_v4 = vsel %vm2058_vm5, %v2392_v44, %v2388_v34  ;;  %v1821_v42 = vadd.f32 %v3911_v61, %v1637_v28 }
 0x182   : >> { %v2407_v40 = vrot.slane %v1822_v39, %v3982_v55  ;;  %v2398_v23 = vsel %vm2065_vm6, %v2397_v48, %v2393_v4 }
 0x183   : >> { %v2402_v56 = vrot.slane %v1821_v42, %v3967_v35  ;;  %v1643_v32 = vpop.xlane.xlu1 %1642 }
 0x184   : >> { %v1824_v62 = vadd.f32 %v3911_v61, %v1643_v32  ;;  %v1641_v36 = vpop.xlane.xlu0 %1640 }
 0x185   : >> { %v2403_v50 = vsel %vm2072_vm7, %v2402_v56, %v2398_v23  ;;  %v1823_v29 = vadd.f32 %v3911_v61, %v1641_v36 }
 0x186   : >> { %v2417_v1 = vrot.slane %v1824_v62, %v4005_v33  ;;  %v2408_v12 = vsel %vm2079_vm8, %v2407_v40, %v2403_v50 }
 0x187   : >> { %v2412_v18 = vrot.slane %v1823_v29, %v4000_v26  ;;  %v1647_v45 = vpop.xlane.xlu1 %1646 }
 0x188   : >> { %v1826_v54 = vadd.f32 %v3911_v61, %v1647_v45  ;;  %v1645_v58 = vpop.xlane.xlu0 %1644 }
 0x189   : >> { %v2413_v15 = vsel %vm2086_vm9, %v2412_v18, %v2408_v12  ;;  %v1825_v47 = vadd.f32 %v3911_v61, %v1645_v58 }
 0x18a   : >> { %v2427_v20 = vrot.slane %v1826_v54, %v4032_v6  ;;  %v2418_v49 = vsel %vm2093_vm10, %v2417_v1, %v2413_v15 }
 0x18b   : >> { %v2422_v59 = vrot.slane %v1825_v47, %v4035_v8  ;;  %v1651_v5 = vpop.xlane.xlu1 %1650 }
 0x18c   : >> { %v1828_v17 = vadd.f32 %v3911_v61, %v1651_v5  ;;  %v1649_v27 = vpop.xlane.xlu0 %1648 }
 0x18d   : >> { %v2423_v37 = vsel %vm2100_vm11, %v2422_v59, %v2418_v49  ;;  %v1827_v21 = vadd.f32 %v3911_v61, %v1649_v27 }
 0x18e   : >> { %v2437_v22 = vrot.slane %v1828_v17, %v4060_v51  ;;  %v2428_v25 = vsel %vm2107_vm12, %v2427_v20, %v2423_v37 }
 0x18f   : >> { %v2432_v43 = vrot.slane %v1827_v21, %v4065_v31  ;;  %v1655_v11 = vpop.xlane.xlu1 %1654 }
 0x190   : >> { %v1830_v13 = vadd.f32 %v3911_v61, %v1655_v11  ;;  %v1653_v7 = vpop.xlane.xlu0 %1652 }
 0x191   : >> { %v2433_v53 = vsel %vm2114_vm13, %v2432_v43, %v2428_v25  ;;  %v1829_v14 = vadd.f32 %v3911_v61, %v1653_v7 }
 0x192   : >> { %v2438_v19 = vsel %vm2121_vm14, %v2437_v22, %v2433_v53  ;;  %v2446_v30 = vrot.slane %v1830_v13, %v3925_v2 }
 0x193   : >> { %v2442_v52 = vrot.slane %v1829_v14, %v3919_v16  ;;  %v1685_v3 = vpop.xlane.xlu1 %1684  ;;  %v4417_v48 = vsel %vm2682_vm15, %v2438_v19, %v4366_v57 }
 0x194   : >> { %v1845_v34 = vadd.f32 %v3911_v61, %v1685_v3  ;;  %v1657_v44 = vpop.xlane.xlu0 %1656 }
 0x195   : >> { %v2447_v38 = vsel %vm2023_vm0, %v2446_v30, %v2442_v52  ;;  %v1831_v39 = vadd.f32 %v3911_v61, %v1657_v44 }
 0x196   : >> { %v2521_v28 = vrot.slane %v1845_v34, %v3919_v16 }
 0x197   : >> { %v2451_v4 = vrot.slane %v1831_v39, %v3915_v60  ;;  %v1659_v42 = vpop.xlane.xlu1 %1658 }
 0x198   : >> { %v1832_v40 = vadd.f32 %v3911_v61, %v1659_v42  ;;  %v1687_v23 = vpop.xlane.xlu0 %1686 }
 0x199   : >> { %v2452_v56 = vsel %vm2030_vm1, %v2451_v4, %v2447_v38  ;;  %v1846_v57 = vadd.f32 %v3911_v61, %v1687_v23 }
 0x19a   : >> { %v2456_v32 = vrot.slane %v1832_v40, %v3922_v63 }
 0x19b   : >> { %v2525_v62 = vrot.slane %v1846_v57, %v3925_v2  ;;  %v1717_v36 = vpop.xlane.xlu1 %1716 }
 0x19c   : >> { %v2457_v50 = vsel %vm2037_vm2, %v2456_v32, %v2452_v56  ;;  %v1689_v29 = vpop.xlane.xlu0 %1688  ;;  %v1861_v1 = vadd.f32 %v3911_v61, %v1717_v36 }
 0x19d   : >> { %v2526_v12 = vsel %vm2023_vm0, %v2525_v62, %v2521_v28  ;;  %v1847_v18 = vadd.f32 %v3911_v61, %v1689_v29 }
 0x19e   : >> { %v2600_v45 = vrot.slane %v1861_v1, %v3919_v16 }
 0x19f   : >> { %v2530_v54 = vrot.slane %v1847_v18, %v3915_v60  ;;  %v1661_v58 = vpop.xlane.xlu1 %1660 }
 0x1a0   : >> { %v1719_v15 = vpop.xlane.xlu0 %1718  ;;  %v1833_v47 = vadd.f32 %v3911_v61, %v1661_v58 }
 0x1a1   : >> { %v2531_v20 = vsel %vm2030_vm1, %v2530_v54, %v2526_v12  ;;  %v1862_v49 = vadd.f32 %v3911_v61, %v1719_v15 }
 0x1a2   : >> { %v2461_v59 = vrot.slane %v1833_v47, %v3935_v9 }
 0x1a3   : >> { %v2604_v5 = vrot.slane %v1862_v49, %v3925_v2  ;;  %v1721_v17 = vpop.xlane.xlu1 %1720 }
 0x1a4   : >> { %v2462_v27 = vsel %vm2044_vm3, %v2461_v59, %v2457_v50  ;;  %v1691_v37 = vpop.xlane.xlu0 %1690  ;;  %v1863_v16 = vadd.f32 %v3911_v61, %v1721_v17 }
 0x1a5   : >> { %v2605_v21 = vsel %vm2023_vm0, %v2604_v5, %v2600_v45  ;;  %v1848_v22 = vadd.f32 %v3911_v61, %v1691_v37  ;;  %vm2684_vm0 = vcmask 1045509  }
 0x1a6   : >> { %v2609_v25 = vrot.slane %v1863_v16, %v3915_v60 }
 0x1a7   : >> { %v2535_v43 = vrot.slane %v1848_v22, %v3922_v63  ;;  %v1693_v11 = vpop.xlane.xlu1 %1692 }
 0x1a8   : >> { %v2610_v13 = vsel %vm2030_vm1, %v2609_v25, %v2605_v21  ;;  %v1663_v7 = vpop.xlane.xlu0 %1662  ;;  %v1849_v2 = vadd.f32 %v3911_v61, %v1693_v11  ;;  %vm1877_vm1 = vcmp.gt.f32.partialorder %v3551_v0, 0.0 }
 0x1a9   : >> { %v2536_v53 = vsel %vm2037_vm2, %v2535_v43, %v2531_v20  ;;  %v1834_v14 = vadd.f32 %v3911_v61, %v1663_v7 }
 0x1aa   : >> { %v2540_v19 = vrot.slane %v1849_v2, %v3935_v9 }
 0x1ab   : >> { %v2466_v30 = vrot.slane %v1834_v14, %v3941_v24  ;;  %v1665_v52 = vpop.xlane.xlu1 %1664 }
 0x1ac   : >> { %v2541_v3 = vsel %vm2044_vm3, %v2540_v19, %v2536_v53  ;;  %v1723_v60 = vpop.xlane.xlu0 %1722  ;;  %v1835_v34 = vadd.f32 %v3911_v61, %v1665_v52 }
 0x1ad   : >> { %v2467_v44 = vsel %vm2051_vm4, %v2466_v30, %v2462_v27  ;;  %v1864_v38 = vadd.f32 %v3911_v61, %v1723_v60 }
 0x1ae   : >> { %v2471_v39 = vrot.slane %v1835_v34, %v3959_v41 }
 0x1af   : >> { %v2614_v28 = vrot.slane %v1864_v38, %v3922_v63  ;;  %v1725_v4 = vpop.xlane.xlu1 %1724 }
 0x1b0   : >> { %v2472_v42 = vsel %vm2058_vm5, %v2471_v39, %v2467_v44  ;;  %v1695_v40 = vpop.xlane.xlu0 %1694  ;;  %v1865_v23 = vadd.f32 %v3911_v61, %v1725_v4 }
 0x1b1   : >> { %v2615_v56 = vsel %vm2037_vm2, %v2614_v28, %v2610_v13  ;;  %v1850_v57 = vadd.f32 %v3911_v61, %v1695_v40  ;;  %vm2686_vm2 = vcmask 1046534  }
 0x1b2   : >> { %v2619_v32 = vrot.slane %v1865_v23, %v3935_v9 }
 0x1b3   : >> { %v2545_v62 = vrot.slane %v1850_v57, %v3941_v24  ;;  %v1697_v36 = vpop.xlane.xlu1 %1696 }
 0x1b4   : >> { %v2620_v50 = vsel %vm2044_vm3, %v2619_v32, %v2615_v56  ;;  %v1667_v29 = vpop.xlane.xlu0 %1666  ;;  %v1851_v63 = vadd.f32 %v3911_v61, %v1697_v36  ;;  %vm2688_vm3 = vcmask 1047559  }
 0x1b5   : >> { %v2546_v1 = vsel %vm2051_vm4, %v2545_v62, %v2541_v3  ;;  %v1836_v12 = vadd.f32 %v3911_v61, %v1667_v29 }
 0x1b6   : >> { %v2550_v18 = vrot.slane %v1851_v63, %v3959_v41 }
 0x1b7   : >> { %v2476_v45 = vrot.slane %v1836_v12, %v3964_v46  ;;  %v1669_v54 = vpop.xlane.xlu1 %1668 }
 0x1b8   : >> { %v2551_v58 = vsel %vm2058_vm5, %v2550_v18, %v2546_v1  ;;  %v1727_v9 = vpop.xlane.xlu0 %1726  ;;  %v1837_v15 = vadd.f32 %v3911_v61, %v1669_v54 }
 0x1b9   : >> { %v2477_v47 = vsel %vm2065_vm6, %v2476_v45, %v2472_v42  ;;  %v1866_v20 = vadd.f32 %v3911_v61, %v1727_v9 }
 0x1ba   : >> { %v2481_v49 = vrot.slane %v1837_v15, %v3967_v35 }
 0x1bb   : >> { %v2624_v59 = vrot.slane %v1866_v20, %v3941_v24  ;;  %v1729_v5 = vpop.xlane.xlu1 %1728 }
 0x1bc   : >> { %v2482_v17 = vsel %vm2072_vm7, %v2481_v49, %v2477_v47  ;;  %v1699_v27 = vpop.xlane.xlu0 %1698  ;;  %v1867_v37 = vadd.f32 %v3911_v61, %v1729_v5 }
 0x1bd   : >> { %v2625_v16 = vsel %vm2051_vm4, %v2624_v59, %v2620_v50  ;;  %v1852_v21 = vadd.f32 %v3911_v61, %v1699_v27 }
 0x1be   : >> { %v2629_v22 = vrot.slane %v1867_v37, %v3959_v41 }
 0x1bf   : >> { %v2555_v25 = vrot.slane %v1852_v21, %v3964_v46  ;;  %v1701_v43 = vpop.xlane.xlu1 %1700 }
 0x1c0   : >> { %v2630_v11 = vsel %vm2058_vm5, %v2629_v22, %v2625_v16  ;;  %v1671_v13 = vpop.xlane.xlu0 %1670  ;;  %v1853_v24 = vadd.f32 %v3911_v61, %v1701_v43 }
 0x1c1   : >> { %v2556_v7 = vsel %vm2065_vm6, %v2555_v25, %v2551_v58  ;;  %v1838_v2 = vadd.f32 %v3911_v61, %v1671_v13 }
 0x1c2   : >> { %v2560_v53 = vrot.slane %v1853_v24, %v3967_v35 }
 0x1c3   : >> { %v2486_v14 = vrot.slane %v1838_v2, %v3982_v55  ;;  %v1673_v19 = vpop.xlane.xlu1 %1672 }
 0x1c4   : >> { %v2561_v30 = vsel %vm2072_vm7, %v2560_v53, %v2556_v7  ;;  %v1731_v41 = vpop.xlane.xlu0 %1730  ;;  %v1839_v52 = vadd.f32 %v3911_v61, %v1673_v19 }
 0x1c5   : >> { %v2487_v3 = vsel %vm2079_vm8, %v2486_v14, %v2482_v17  ;;  %v1868_v60 = vadd.f32 %v3911_v61, %v1731_v41 }
 0x1c6   : >> { %v2491_v34 = vrot.slane %v1839_v52, %v4000_v26 }
 0x1c7   : >> { %v2634_v44 = vrot.slane %v1868_v60, %v3964_v46  ;;  %v1733_v38 = vpop.xlane.xlu1 %1732 }
 0x1c8   : >> { %v2492_v39 = vsel %vm2086_vm9, %v2491_v34, %v2487_v3  ;;  %v1703_v28 = vpop.xlane.xlu0 %1702  ;;  %v1869_v4 = vadd.f32 %v3911_v61, %v1733_v38 }
 0x1c9   : >> { %v2635_v42 = vsel %vm2065_vm6, %v2634_v44, %v2630_v11  ;;  %v1854_v40 = vadd.f32 %v3911_v61, %v1703_v28 }
 0x1ca   : >> { %v2639_v23 = vrot.slane %v1869_v4, %v3967_v35 }
 0x1cb   : >> { %v2565_v56 = vrot.slane %v1854_v40, %v3982_v55  ;;  %v1705_v57 = vpop.xlane.xlu1 %1704 }
 0x1cc   : >> { %v2640_v32 = vsel %vm2072_vm7, %v2639_v23, %v2635_v42  ;;  %v1675_v62 = vpop.xlane.xlu0 %1674  ;;  %v1855_v46 = vadd.f32 %v3911_v61, %v1705_v57 }
 0x1cd   : >> { %v2566_v36 = vsel %vm2079_vm8, %v2565_v56, %v2561_v30  ;;  %v1840_v50 = vadd.f32 %v3911_v61, %v1675_v62 }
 0x1ce   : >> { %v2570_v29 = vrot.slane %v1855_v46, %v4000_v26 }
 0x1cf   : >> { %v2496_v63 = vrot.slane %v1840_v50, %v4005_v33  ;;  %v1677_v1 = vpop.xlane.xlu1 %1676 }
 0x1d0   : >> { %v2571_v12 = vsel %vm2086_vm9, %v2570_v29, %v2566_v36  ;;  %v1735_v35 = vpop.xlane.xlu0 %1734  ;;  %v1841_v18 = vadd.f32 %v3911_v61, %v1677_v1 }
 0x1d1   : >> { %v2497_v45 = vsel %vm2093_vm10, %v2496_v63, %v2492_v39  ;;  %v1870_v54 = vadd.f32 %v3911_v61, %v1735_v35  ;;  %v3381_v63 = vmov 0  }
 0x1d2   : >> { %v2501_v58 = vrot.slane %v1841_v18, %v4035_v8  ;;  %v1878_v1 = vsel %vm1877_vm1, 1, %v3381_v63 }
 0x1d3   : >> { %v2644_v9 = vrot.slane %v1870_v54, %v3982_v55  ;;  %v1737_v15 = vpop.xlane.xlu1 %1736 }
 0x1d4   : >> { %v2502_v47 = vsel %vm2100_vm11, %v2501_v58, %v2497_v45  ;;  %v1707_v20 = vpop.xlane.xlu0 %1706  ;;  %v1871_v49 = vadd.f32 %v3911_v61, %v1737_v15  ;;  %v1882_v15 = vrot.slane %v1878_v1, %v3572_v10 }
 0x1d5   : >> { %v2645_v59 = vsel %vm2079_vm8, %v2644_v9, %v2640_v32  ;;  %v1856_v5 = vadd.f32 %v3911_v61, %v1707_v20 }
 0x1d6   : >> { %v2649_v17 = vrot.slane %v1871_v49, %v4000_v26  ;;  %vm1883_vm4 = vcmp.eq.s32.totalorder %v1882_v15, 1 }
 0x1d7   : >> { %v2575_v27 = vrot.slane %v1856_v5, %v4005_v33  ;;  %v1709_v37 = vpop.xlane.xlu1 %1708 }
 0x1d8   : >> { %v2650_v16 = vsel %vm2086_vm9, %v2649_v17, %v2645_v59  ;;  %v1679_v21 = vpop.xlane.xlu0 %1678  ;;  %v1857_v55 = vadd.f32 %v3911_v61, %v1709_v37 }
 0x1d9   : >> { %v2576_v22 = vsel %vm2093_vm10, %v2575_v27, %v2571_v12  ;;  %v1842_v25 = vadd.f32 %v3911_v61, %v1679_v21 }
 0x1da   : >> { %v2580_v43 = vrot.slane %v1857_v55, %v4035_v8 }
 0x1db   : >> { %v2506_v11 = vrot.slane %v1842_v25, %v4032_v6  ;;  %v1681_v13 = vpop.xlane.xlu1 %1680 }
 0x1dc   : >> { %v2581_v24 = vsel %vm2100_vm11, %v2580_v43, %v2576_v22  ;;  %v1739_v26 = vpop.xlane.xlu0 %1738  ;;  %v1843_v7 = vadd.f32 %v3911_v61, %v1681_v13 }
 0x1dd   : >> { %v2507_v2 = vsel %vm2107_vm12, %v2506_v11, %v2502_v47  ;;  %v1872_v53 = vadd.f32 %v3911_v61, %v1739_v26 }
 0x1de   : >> { %v2511_v14 = vrot.slane %v1843_v7, %v4065_v31 }
 0x1df   : >> { %v2654_v19 = vrot.slane %v1872_v53, %v4005_v33  ;;  %v1741_v30 = vpop.xlane.xlu1 %1740 }
 0x1e0   : >> { %v2512_v41 = vsel %vm2114_vm13, %v2511_v14, %v2507_v2  ;;  %v1711_v52 = vpop.xlane.xlu0 %1710  ;;  %v1873_v3 = vadd.f32 %v3911_v61, %v1741_v30 }
 0x1e1   : >> { %v2655_v60 = vsel %vm2093_vm10, %v2654_v19, %v2650_v16  ;;  %v1858_v34 = vadd.f32 %v3911_v61, %v1711_v52 }
 0x1e2   : >> { %v2659_v44 = vrot.slane %v1873_v3, %v4035_v8 }
 0x1e3   : >> { %v2585_v38 = vrot.slane %v1858_v34, %v4032_v6  ;;  %v1713_v39 = vpop.xlane.xlu1 %1712 }
 0x1e4   : >> { %v2660_v28 = vsel %vm2100_vm11, %v2659_v44, %v2655_v60  ;;  %v1683_v4 = vpop.xlane.xlu0 %1682  ;;  %v1859_v33 = vadd.f32 %v3911_v61, %v1713_v39 }
 0x1e5   : >> { %v2586_v42 = vsel %vm2107_vm12, %v2585_v38, %v2581_v24  ;;  %v1844_v40 = vadd.f32 %v3911_v61, %v1683_v4 }
 0x1e6   : >> { %v2590_v23 = vrot.slane %v1859_v33, %v4065_v31 }
 0x1e7   : >> { %v2516_v56 = vrot.slane %v1844_v40, %v4060_v51  ;;  %v1715_v57 = vpop.xlane.xlu1 %1714 }
 0x1e8   : >> { %v2591_v8 = vsel %vm2114_vm13, %v2590_v23, %v2586_v42  ;;  %v1743_v32 = vpop.xlane.xlu0 %1742  ;;  %v1860_v62 = vadd.f32 %v3911_v61, %v1715_v57 }
 0x1e9   : >> { %v2517_v46 = vsel %vm2121_vm14, %v2516_v56, %v2512_v41  ;;  %v1874_v36 = vadd.f32 %v3911_v61, %v1743_v32 }
 0x1ea   : >> { %v2685_v50 = vsel %vm2684_vm0, %v2517_v46, %v4417_v48  ;;  %v2595_v29 = vrot.slane %v1860_v62, %v4060_v51 }
 0x1eb   : >> { %v2664_v12 = vrot.slane %v1874_v36, %v4032_v6  ;;  %v1747_v35 = vpop.xlane.xlu1 %1746 }
 0x1ec   : >> { %v2596_v18 = vsel %vm2121_vm14, %v2595_v29, %v2591_v8  ;;  %v1745_v45 = vpop.xlane.xlu0 %1744  ;;  %v1876_v54 = vadd.f32 %v3911_v61, %v1747_v35 }
 0x1ed   : >> { %v2665_v58 = vsel %vm2107_vm12, %v2664_v12, %v2660_v28  ;;  %v2687_v9 = vsel %vm2686_vm2, %v2596_v18, %v2685_v50  ;;  %v1875_v48 = vadd.f32 %v3911_v61, %v1745_v45 }
 0x1ee   : >> { %v2674_v47 = vrot.slane %v1876_v54, %v4060_v51 }
 0x1ef   : >> { %v2669_v20 = vrot.slane %v1875_v48, %v4065_v31 }
 0x1f1   : >> { %v2670_v6 = vsel %vm2114_vm13, %v2669_v20, %v2665_v58  ;;  %349 = sbr.rel (!%p347_p8) target bundleno = 71 (0x47), region = 110 }
 0x1f2   : >> { %v2675_v49 = vsel %vm2121_vm14, %v2674_v47, %v2670_v6 }
 0x1f3   : >> { %v2689_v59 = vsel %vm2688_vm3, %v2675_v49, %v2687_v9 }
 0x1f4   : >> { %v2691_v5 = vsel %vm1883_vm4, %v2689_v59, -1000000.0 }
 0x1f5   : >> { %2693 = vst [vmem:[%s2692_s0] sm:$0xff] %v2691_v5 }
 0x1f6   : > { %3295 = shalt.err (!%p3292_p10)
}
 0x1f7   : > { %s3296_s30 = scalar_lea.hbm %s4569_s4, 256  ;;  %s3300_s17 = scalar_lea.hbm %s4625_s5, 512 }
 0x1f8   : > { %p3297_p13 = scmp.ne.s32.totalorder %s4569_s4, %s3296_s30  ;;  %p3301_p8 = scmp.lt.s32.totalorder %s4569_s4, %s4625_s5 }
 0x1f9   : > { %p3302_p2 = scmp.lt.s32.totalorder %s3300_s17, %s3296_s30 }
 0x1fa   : > { %p3298_p3 = pnand %p3297_p13, %p3469_p9 }
 0x1fb   : > { %p3303_p5 = por %p3302_p2, %p3301_p8 }
 0x1fc   : > { %p3299_p0 = pneg %p3298_p3 }
 0x1fe   : > { %p3304_p6 = pnand %p3303_p5, %p3299_p0 }
 0x200   : > { %3307 = shalt.err (!%p3304_p6)
}
 0x201   : > { %s3383_s13 = smov 128   ;;  %s3384_s0 = smov 8  }
 0x202   : > { %2877 = dma.vmem_to_hbm [thread:$0]  (%p3469_p9), %s4572_s26, 256, %s4569_s4, %s2695_s6, %s3383_s13, %s3383_s13, %s3384_s0  }
 0x203 PF: > { %s2726_s27 = sand.u32 1, %s3350_s20   ;;  %p2887_p4 = pnand %p2852_p12, %p3476_p11 }
 0x204   : > { %s2727_s11 = scalar_lea.sflag [#allocation6], %s2726_s27 }
 0x205   : > { %p2888_p7 = pneg %p2887_p4 }
 0x207   : > { %3345 = dma.done.wait (%p2888_p7), %s2727_s11, 256  }
 0x208   : > { %3347 = vsyncadd (%p2888_p7), %s2727_s11, 4294967040  ;;  %s25_s25 = sadd.s32 1, %s3370_s25   ;;  %s4636_s7 = sld [smem:[#allocation13_spill]] }
 0x209   : > { %p22_p1 = scmp.ge.s32.totalorder %s25_s25, 4   ;;  %s4637_s20 = smov %s3354_s21 }
 0x20a   : > { %s4638_s21 = smov %s3358_s22  ;;  %s4639_s22 = smov %s3474_s8 }
 0x20b   : > { %s4640_s23 = smov %s3366_s24  ;;  %24 = sbr.rel (!%p22_p1) target bundleno = 11 (0xb), region = 121 }
 0x20e   : > { %s4641_s24 = smov %s4636_s7 }
 0x210   :  { %2732 = vsyncpa [#allocation5], 1 }
 0x211   :  { %2734 = vsyncpa [#allocation5 + $0x1], 1 }
 0x212   :  { %2735 = vsyncpa [#allocation8], 1 }
 0x213   :  { %2737 = vsyncpa [#allocation8 + $0x1], 1 }
 0x214   :  { %2738 = vsyncpa [#allocation6], 1 }
 0x215   :  { %2740 = vsyncpa [#allocation6 + $0x1], 1 }

</bundles_post_ra>
